<compile_context>
chip_gen: v7x
topology: tpu7x:2x2x1
jax: 0.10.0
libtpu: 0.0.40
codegen_flags: <defaults>
</compile_context>

<pallas_src>
import numpy as np
import jax
import jax.numpy as jnp
from jax.experimental import pallas as pl
from jax.experimental.pallas import tpu as pltpu

IN_DIM = 2       # module default in_dim
HIDDEN = 10      # module default hidden_size
OUT_DIM = 3      # out_dim chosen for the example
N_VERT = 3       # len(fix_points), number of simplex vertices
BATCH = 8        # matches the 8-sublane vreg tile
N_LAYERS = 8     # fc1..fc8 (duplicate fc7 in __init__ overwrites itself)
PAD = 128        # lane-dense padding for all feature dims


def simplex_mlp_kernel(coeffs_ref, x_ref, w_ref, b_ref, o_ref):
    """coeffs_ref: SMEM (V,) f32
       x_ref:      VMEM (B, 128) f32   (zero-padded activations)
       w_ref:      VMEM (L, V, 128, 128) f32 (zero-padded stacked weights, x@W layout)
       b_ref:      VMEM (L, V, 1, 128) f32   (zero-padded stacked biases)
       o_ref:      VMEM (B, 128) f32   (lane-dense output)
    """
    n_layers = w_ref.shape[0]
    n_vert = w_ref.shape[1]

    h = x_ref[...]
    for l in range(n_layers):
        # Simplex combine for this layer: scalar (SMEM) x vreg, fused with the chain.
        w_eff = coeffs_ref[0] * w_ref[l, 0]
        b_eff = coeffs_ref[0] * b_ref[l, 0]
        for v in range(1, n_vert):
            w_eff = w_eff + coeffs_ref[v] * w_ref[l, v]
            b_eff = b_eff + coeffs_ref[v] * b_ref[l, v]
        # (B,128) @ (128,128) on the MXU, then bias add; ReLU on all but the last.
        h = jnp.dot(h, w_eff, preferred_element_type=jnp.float32) + b_eff
        if l < n_layers - 1:
            h = jnp.maximum(h, 0.0)

    o_ref[...] = h.astype(o_ref.dtype)   # unmasked, lane-dense (B,128) store


def basic_simplex_forward(x, coeffs_t, weights, biases):
    """x: (B, IN_DIM); coeffs_t: (N_VERT,); weights[i]: (V, in_i, out_i); biases[i]: (V, out_i)."""
    B = x.shape[0]
    n_layers = len(weights)
    out_dim = weights[-1].shape[-1]

    # Pack all layers into zero-padded, lane-dense slabs host-side with numpy
    # (zeros are mathematically inert through the whole chain).
    w_np = np.zeros((n_layers, N_VERT, PAD, PAD), np.float32)
    b_np = np.zeros((n_layers, N_VERT, 1, PAD), np.float32)
    for i, (w, b) in enumerate(zip(weights, biases)):
        din, dout = w.shape[1], w.shape[2]
        w_np[i, :, :din, :dout] = np.asarray(w, np.float32)
        b_np[i, :, 0, :dout] = np.asarray(b, np.float32)
    w_slab = jnp.asarray(w_np)
    b_slab = jnp.asarray(b_np)

    # Zero-pad the activations to 128 lanes.
    x_pad = jnp.zeros((B, PAD), jnp.float32).at[:, : x.shape[1]].set(x.astype(jnp.float32))
    coeffs = coeffs_t.astype(jnp.float32)

    vmem = pl.BlockSpec(memory_space=pltpu.MemorySpace.VMEM)
    smem = pl.BlockSpec(memory_space=pltpu.MemorySpace.SMEM)

    flops = n_layers * (2 * B * PAD * PAD) + n_layers * (2 * N_VERT * PAD * PAD)
    bytes_accessed = 4 * (w_slab.size + b_slab.size + x_pad.size + B * PAD)

    out = pl.pallas_call(
        simplex_mlp_kernel,
        out_shape=jax.ShapeDtypeStruct((B, PAD), jnp.float32),
        in_specs=[smem, vmem, vmem, vmem],
        out_specs=vmem,
        cost_estimate=pl.CostEstimate(
            flops=flops, transcendentals=0, bytes_accessed=bytes_accessed),
    )(coeffs, x_pad, w_slab, b_slab)

    return out[:, :out_dim]


def reference_forward(x, coeffs_t, weights, biases):
    h = x
    for i, (w, b) in enumerate(zip(weights, biases)):
        wc = jnp.einsum('v,vio->io', coeffs_t, w)
        bc = jnp.einsum('v,vo->o', coeffs_t, b)
        h = h @ wc + bc
        if i < len(weights) - 1:
            h = jnp.maximum(h, 0.0)
    return h


def init_params(key):
    """Deterministic stand-in for SimplexLinear parameter init (no checkpoint load)."""
    dims = [(IN_DIM, HIDDEN)] + [(HIDDEN, HIDDEN)] * 6 + [(HIDDEN, OUT_DIM)]
    weights, biases = [], []
    for (din, dout) in dims:
        key, kw, kb = jax.random.split(key, 3)
        weights.append(0.3 * jax.random.normal(kw, (N_VERT, din, dout), jnp.float32))
        biases.append(0.1 * jax.random.normal(kb, (N_VERT, dout), jnp.float32))
    return weights, biases


if __name__ == "__main__":
    key = jax.random.PRNGKey(0)
    key, kx, kc = jax.random.split(key, 3)
    x = jax.random.normal(kx, (BATCH, IN_DIM), jnp.float32)
    raw = jax.random.uniform(kc, (N_VERT,), jnp.float32) + 0.1
    coeffs_t = raw / jnp.sum(raw)                   # simplex coefficients (sum to 1)
    weights, biases = init_params(key)

    out = basic_simplex_forward(x, coeffs_t, weights, biases)
    out = jax.block_until_ready(out)

    ref = reference_forward(x, coeffs_t, weights, biases)
    assert out.shape == (BATCH, OUT_DIM)
    assert jnp.allclose(out, ref, atol=1e-4, rtol=1e-4), "mismatch vs reference"
    print("KERNEL_OK")
</pallas_src>

<mosaic_0001>
module attributes {stable_mosaic.version = 11 : i64} {
  func.func @simplex_mlp_kernel(%arg0: memref<3xf32, #tpu.memory_space<smem>>, %arg1: memref<8x128xf32, #tpu.memory_space<vmem>>, %arg2: memref<8x3x128x128xf32, #tpu.memory_space<vmem>>, %arg3: memref<8x3x1x128xf32, #tpu.memory_space<vmem>>, %arg4: memref<8x128xf32, #tpu.memory_space<vmem>>) attributes {dimension_semantics = [], scalar_prefetch = 0 : i64, scratch_operands = 0 : i64, tpu.core_type = #tpu.core_type<tc>} {
    %c0 = arith.constant 0 : index
    %c0_0 = arith.constant 0 : index
    %0 = vector.load %arg1[%c0, %c0_0] : memref<8x128xf32, #tpu.memory_space<vmem>>, vector<8x128xf32>
    %c0_1 = arith.constant 0 : index
    %1 = memref.load %arg0[%c0_1] : memref<3xf32, #tpu.memory_space<smem>>
    %c0_2 = arith.constant 0 : index
    %c0_3 = arith.constant 0 : index
    %c0_4 = arith.constant 0 : index
    %c0_5 = arith.constant 0 : index
    %2 = vector.load %arg2[%c0_2, %c0_3, %c0_4, %c0_5] : memref<8x3x128x128xf32, #tpu.memory_space<vmem>>, vector<1x1x128x128xf32>
    %3 = vector.shape_cast %2 : vector<1x1x128x128xf32> to vector<128x128xf32>
    %4 = vector.broadcast %1 : f32 to vector<128x128xf32>
    %5 = arith.mulf %4, %3 : vector<128x128xf32>
    %c0_6 = arith.constant 0 : index
    %6 = memref.load %arg0[%c0_6] : memref<3xf32, #tpu.memory_space<smem>>
    %c0_7 = arith.constant 0 : index
    %c0_8 = arith.constant 0 : index
    %c0_9 = arith.constant 0 : index
    %c0_10 = arith.constant 0 : index
    %7 = vector.load %arg3[%c0_7, %c0_8, %c0_9, %c0_10] : memref<8x3x1x128xf32, #tpu.memory_space<vmem>>, vector<1x1x1x128xf32>
    %8 = vector.shape_cast %7 : vector<1x1x1x128xf32> to vector<1x128xf32>
    %9 = vector.broadcast %6 : f32 to vector<1x128xf32>
    %10 = arith.mulf %9, %8 : vector<1x128xf32>
    %c1 = arith.constant 1 : index
    %11 = memref.load %arg0[%c1] : memref<3xf32, #tpu.memory_space<smem>>
    %c0_11 = arith.constant 0 : index
    %c1_12 = arith.constant 1 : index
    %c0_13 = arith.constant 0 : index
    %c0_14 = arith.constant 0 : index
    %12 = vector.load %arg2[%c0_11, %c1_12, %c0_13, %c0_14] : memref<8x3x128x128xf32, #tpu.memory_space<vmem>>, vector<1x1x128x128xf32>
    %13 = vector.shape_cast %12 : vector<1x1x128x128xf32> to vector<128x128xf32>
    %14 = vector.broadcast %11 : f32 to vector<128x128xf32>
    %15 = arith.mulf %14, %13 : vector<128x128xf32>
    %16 = arith.addf %5, %15 : vector<128x128xf32>
    %c1_15 = arith.constant 1 : index
    %17 = memref.load %arg0[%c1_15] : memref<3xf32, #tpu.memory_space<smem>>
    %c0_16 = arith.constant 0 : index
    %c1_17 = arith.constant 1 : index
    %c0_18 = arith.constant 0 : index
    %c0_19 = arith.constant 0 : index
    %18 = vector.load %arg3[%c0_16, %c1_17, %c0_18, %c0_19] : memref<8x3x1x128xf32, #tpu.memory_space<vmem>>, vector<1x1x1x128xf32>
    %19 = vector.shape_cast %18 : vector<1x1x1x128xf32> to vector<1x128xf32>
    %20 = vector.broadcast %17 : f32 to vector<1x128xf32>
    %21 = arith.mulf %20, %19 : vector<1x128xf32>
    %22 = arith.addf %10, %21 : vector<1x128xf32>
    %c2 = arith.constant 2 : index
    %23 = memref.load %arg0[%c2] : memref<3xf32, #tpu.memory_space<smem>>
    %c0_20 = arith.constant 0 : index
    %c2_21 = arith.constant 2 : index
    %c0_22 = arith.constant 0 : index
    %c0_23 = arith.constant 0 : index
    %24 = vector.load %arg2[%c0_20, %c2_21, %c0_22, %c0_23] : memref<8x3x128x128xf32, #tpu.memory_space<vmem>>, vector<1x1x128x128xf32>
    %25 = vector.shape_cast %24 : vector<1x1x128x128xf32> to vector<128x128xf32>
    %26 = vector.broadcast %23 : f32 to vector<128x128xf32>
    %27 = arith.mulf %26, %25 : vector<128x128xf32>
    %28 = arith.addf %16, %27 : vector<128x128xf32>
    %c2_24 = arith.constant 2 : index
    %29 = memref.load %arg0[%c2_24] : memref<3xf32, #tpu.memory_space<smem>>
    %c0_25 = arith.constant 0 : index
    %c2_26 = arith.constant 2 : index
    %c0_27 = arith.constant 0 : index
    %c0_28 = arith.constant 0 : index
    %30 = vector.load %arg3[%c0_25, %c2_26, %c0_27, %c0_28] : memref<8x3x1x128xf32, #tpu.memory_space<vmem>>, vector<1x1x1x128xf32>
    %31 = vector.shape_cast %30 : vector<1x1x1x128xf32> to vector<1x128xf32>
    %32 = vector.broadcast %29 : f32 to vector<1x128xf32>
    %33 = arith.mulf %32, %31 : vector<1x128xf32>
    %34 = arith.addf %22, %33 : vector<1x128xf32>
    %cst = arith.constant dense<0.000000e+00> : vector<8x128xf32>
    %35 = tpu.matmul %0, %28, %cst {dimension_numbers = #tpu.dot_dimension_numbers<[1], [0], [0], [1], [0, 0, 1, 1], [], []>} : vector<8x128xf32>, vector<128x128xf32>, vector<8x128xf32> -> vector<8x128xf32>
    %36 = vector.broadcast %34 : vector<1x128xf32> to vector<8x128xf32>
    %37 = arith.addf %35, %36 : vector<8x128xf32>
    %cst_29 = arith.constant 0.000000e+00 : f32
    %38 = vector.broadcast %cst_29 : f32 to vector<8x128xf32>
    %39 = arith.maximumf %37, %38 : vector<8x128xf32>
    %c0_30 = arith.constant 0 : index
    %40 = memref.load %arg0[%c0_30] : memref<3xf32, #tpu.memory_space<smem>>
    %c1_31 = arith.constant 1 : index
    %c0_32 = arith.constant 0 : index
    %c0_33 = arith.constant 0 : index
    %c0_34 = arith.constant 0 : index
    %41 = vector.load %arg2[%c1_31, %c0_32, %c0_33, %c0_34] : memref<8x3x128x128xf32, #tpu.memory_space<vmem>>, vector<1x1x128x128xf32>
    %42 = vector.shape_cast %41 : vector<1x1x128x128xf32> to vector<128x128xf32>
    %43 = vector.broadcast %40 : f32 to vector<128x128xf32>
    %44 = arith.mulf %43, %42 : vector<128x128xf32>
    %c0_35 = arith.constant 0 : index
    %45 = memref.load %arg0[%c0_35] : memref<3xf32, #tpu.memory_space<smem>>
    %c1_36 = arith.constant 1 : index
    %c0_37 = arith.constant 0 : index
    %c0_38 = arith.constant 0 : index
    %c0_39 = arith.constant 0 : index
    %46 = vector.load %arg3[%c1_36, %c0_37, %c0_38, %c0_39] : memref<8x3x1x128xf32, #tpu.memory_space<vmem>>, vector<1x1x1x128xf32>
    %47 = vector.shape_cast %46 : vector<1x1x1x128xf32> to vector<1x128xf32>
    %48 = vector.broadcast %45 : f32 to vector<1x128xf32>
    %49 = arith.mulf %48, %47 : vector<1x128xf32>
    %c1_40 = arith.constant 1 : index
    %50 = memref.load %arg0[%c1_40] : memref<3xf32, #tpu.memory_space<smem>>
    %c1_41 = arith.constant 1 : index
    %c1_42 = arith.constant 1 : index
    %c0_43 = arith.constant 0 : index
    %c0_44 = arith.constant 0 : index
    %51 = vector.load %arg2[%c1_41, %c1_42, %c0_43, %c0_44] : memref<8x3x128x128xf32, #tpu.memory_space<vmem>>, vector<1x1x128x128xf32>
    %52 = vector.shape_cast %51 : vector<1x1x128x128xf32> to vector<128x128xf32>
    %53 = vector.broadcast %50 : f32 to vector<128x128xf32>
    %54 = arith.mulf %53, %52 : vector<128x128xf32>
    %55 = arith.addf %44, %54 : vector<128x128xf32>
    %c1_45 = arith.constant 1 : index
    %56 = memref.load %arg0[%c1_45] : memref<3xf32, #tpu.memory_space<smem>>
    %c1_46 = arith.constant 1 : index
    %c1_47 = arith.constant 1 : index
    %c0_48 = arith.constant 0 : index
    %c0_49 = arith.constant 0 : index
    %57 = vector.load %arg3[%c1_46, %c1_47, %c0_48, %c0_49] : memref<8x3x1x128xf32, #tpu.memory_space<vmem>>, vector<1x1x1x128xf32>
    %58 = vector.shape_cast %57 : vector<1x1x1x128xf32> to vector<1x128xf32>
    %59 = vector.broadcast %56 : f32 to vector<1x128xf32>
    %60 = arith.mulf %59, %58 : vector<1x128xf32>
    %61 = arith.addf %49, %60 : vector<1x128xf32>
    %c2_50 = arith.constant 2 : index
    %62 = memref.load %arg0[%c2_50] : memref<3xf32, #tpu.memory_space<smem>>
    %c1_51 = arith.constant 1 : index
    %c2_52 = arith.constant 2 : index
    %c0_53 = arith.constant 0 : index
    %c0_54 = arith.constant 0 : index
    %63 = vector.load %arg2[%c1_51, %c2_52, %c0_53, %c0_54] : memref<8x3x128x128xf32, #tpu.memory_space<vmem>>, vector<1x1x128x128xf32>
    %64 = vector.shape_cast %63 : vector<1x1x128x128xf32> to vector<128x128xf32>
    %65 = vector.broadcast %62 : f32 to vector<128x128xf32>
    %66 = arith.mulf %65, %64 : vector<128x128xf32>
    %67 = arith.addf %55, %66 : vector<128x128xf32>
    %c2_55 = arith.constant 2 : index
    %68 = memref.load %arg0[%c2_55] : memref<3xf32, #tpu.memory_space<smem>>
    %c1_56 = arith.constant 1 : index
    %c2_57 = arith.constant 2 : index
    %c0_58 = arith.constant 0 : index
    %c0_59 = arith.constant 0 : index
    %69 = vector.load %arg3[%c1_56, %c2_57, %c0_58, %c0_59] : memref<8x3x1x128xf32, #tpu.memory_space<vmem>>, vector<1x1x1x128xf32>
    %70 = vector.shape_cast %69 : vector<1x1x1x128xf32> to vector<1x128xf32>
    %71 = vector.broadcast %68 : f32 to vector<1x128xf32>
    %72 = arith.mulf %71, %70 : vector<1x128xf32>
    %73 = arith.addf %61, %72 : vector<1x128xf32>
    %cst_60 = arith.constant dense<0.000000e+00> : vector<8x128xf32>
    %74 = tpu.matmul %39, %67, %cst_60 {dimension_numbers = #tpu.dot_dimension_numbers<[1], [0], [0], [1], [0, 0, 1, 1], [], []>} : vector<8x128xf32>, vector<128x128xf32>, vector<8x128xf32> -> vector<8x128xf32>
    %75 = vector.broadcast %73 : vector<1x128xf32> to vector<8x128xf32>
    %76 = arith.addf %74, %75 : vector<8x128xf32>
    %cst_61 = arith.constant 0.000000e+00 : f32
    %77 = vector.broadcast %cst_61 : f32 to vector<8x128xf32>
    %78 = arith.maximumf %76, %77 : vector<8x128xf32>
    %c0_62 = arith.constant 0 : index
    %79 = memref.load %arg0[%c0_62] : memref<3xf32, #tpu.memory_space<smem>>
    %c2_63 = arith.constant 2 : index
    %c0_64 = arith.constant 0 : index
    %c0_65 = arith.constant 0 : index
    %c0_66 = arith.constant 0 : index
    %80 = vector.load %arg2[%c2_63, %c0_64, %c0_65, %c0_66] : memref<8x3x128x128xf32, #tpu.memory_space<vmem>>, vector<1x1x128x128xf32>
    %81 = vector.shape_cast %80 : vector<1x1x128x128xf32> to vector<128x128xf32>
    %82 = vector.broadcast %79 : f32 to vector<128x128xf32>
    %83 = arith.mulf %82, %81 : vector<128x128xf32>
    %c0_67 = arith.constant 0 : index
    %84 = memref.load %arg0[%c0_67] : memref<3xf32, #tpu.memory_space<smem>>
    %c2_68 = arith.constant 2 : index
    %c0_69 = arith.constant 0 : index
    %c0_70 = arith.constant 0 : index
    %c0_71 = arith.constant 0 : index
    %85 = vector.load %arg3[%c2_68, %c0_69, %c0_70, %c0_71] : memref<8x3x1x128xf32, #tpu.memory_space<vmem>>, vector<1x1x1x128xf32>
    %86 = vector.shape_cast %85 : vector<1x1x1x128xf32> to vector<1x128xf32>
    %87 = vector.broadcast %84 : f32 to vector<1x128xf32>
    %88 = arith.mulf %87, %86 : vector<1x128xf32>
    %c1_72 = arith.constant 1 : index
    %89 = memref.load %arg0[%c1_72] : memref<3xf32, #tpu.memory_space<smem>>
    %c2_73 = arith.constant 2 : index
    %c1_74 = arith.constant 1 : index
    %c0_75 = arith.constant 0 : index
    %c0_76 = arith.constant 0 : index
    %90 = vector.load %arg2[%c2_73, %c1_74, %c0_75, %c0_76] : memref<8x3x128x128xf32, #tpu.memory_space<vmem>>, vector<1x1x128x128xf32>
    %91 = vector.shape_cast %90 : vector<1x1x128x128xf32> to vector<128x128xf32>
    %92 = vector.broadcast %89 : f32 to vector<128x128xf32>
    %93 = arith.mulf %92, %91 : vector<128x128xf32>
    %94 = arith.addf %83, %93 : vector<128x128xf32>
    %c1_77 = arith.constant 1 : index
    %95 = memref.load %arg0[%c1_77] : memref<3xf32, #tpu.memory_space<smem>>
    %c2_78 = arith.constant 2 : index
    %c1_79 = arith.constant 1 : index
    %c0_80 = arith.constant 0 : index
    %c0_81 = arith.constant 0 : index
    %96 = vector.load %arg3[%c2_78, %c1_79, %c0_80, %c0_81] : memref<8x3x1x128xf32, #tpu.memory_space<vmem>>, vector<1x1x1x128xf32>
    %97 = vector.shape_cast %96 : vector<1x1x1x128xf32> to vector<1x128xf32>
    %98 = vector.broadcast %95 : f32 to vector<1x128xf32>
    %99 = arith.mulf %98, %97 : vector<1x128xf32>
    %100 = arith.addf %88, %99 : vector<1x128xf32>
    %c2_82 = arith.constant 2 : index
    %101 = memref.load %arg0[%c2_82] : memref<3xf32, #tpu.memory_space<smem>>
    %c2_83 = arith.constant 2 : index
    %c2_84 = arith.constant 2 : index
    %c0_85 = arith.constant 0 : index
    %c0_86 = arith.constant 0 : index
    %102 = vector.load %arg2[%c2_83, %c2_84, %c0_85, %c0_86] : memref<8x3x128x128xf32, #tpu.memory_space<vmem>>, vector<1x1x128x128xf32>
    %103 = vector.shape_cast %102 : vector<1x1x128x128xf32> to vector<128x128xf32>
    %104 = vector.broadcast %101 : f32 to vector<128x128xf32>
    %105 = arith.mulf %104, %103 : vector<128x128xf32>
    %106 = arith.addf %94, %105 : vector<128x128xf32>
    %c2_87 = arith.constant 2 : index
    %107 = memref.load %arg0[%c2_87] : memref<3xf32, #tpu.memory_space<smem>>
    %c2_88 = arith.constant 2 : index
    %c2_89 = arith.constant 2 : index
    %c0_90 = arith.constant 0 : index
    %c0_91 = arith.constant 0 : index
    %108 = vector.load %arg3[%c2_88, %c2_89, %c0_90, %c0_91] : memref<8x3x1x128xf32, #tpu.memory_space<vmem>>, vector<1x1x1x128xf32>
    %109 = vector.shape_cast %108 : vector<1x1x1x128xf32> to vector<1x128xf32>
    %110 = vector.broadcast %107 : f32 to vector<1x128xf32>
    %111 = arith.mulf %110, %109 : vector<1x128xf32>
    %112 = arith.addf %100, %111 : vector<1x128xf32>
    %cst_92 = arith.constant dense<0.000000e+00> : vector<8x128xf32>
    %113 = tpu.matmul %78, %106, %cst_92 {dimension_numbers = #tpu.dot_dimension_numbers<[1], [0], [0], [1], [0, 0, 1, 1], [], []>} : vector<8x128xf32>, vector<128x128xf32>, vector<8x128xf32> -> vector<8x128xf32>
    %114 = vector.broadcast %112 : vector<1x128xf32> to vector<8x128xf32>
    %115 = arith.addf %113, %114 : vector<8x128xf32>
    %cst_93 = arith.constant 0.000000e+00 : f32
    %116 = vector.broadcast %cst_93 : f32 to vector<8x128xf32>
    %117 = arith.maximumf %115, %116 : vector<8x128xf32>
    %c0_94 = arith.constant 0 : index
    %118 = memref.load %arg0[%c0_94] : memref<3xf32, #tpu.memory_space<smem>>
    %c3 = arith.constant 3 : index
    %c0_95 = arith.constant 0 : index
    %c0_96 = arith.constant 0 : index
    %c0_97 = arith.constant 0 : index
    %119 = vector.load %arg2[%c3, %c0_95, %c0_96, %c0_97] : memref<8x3x128x128xf32, #tpu.memory_space<vmem>>, vector<1x1x128x128xf32>
    %120 = vector.shape_cast %119 : vector<1x1x128x128xf32> to vector<128x128xf32>
    %121 = vector.broadcast %118 : f32 to vector<128x128xf32>
    %122 = arith.mulf %121, %120 : vector<128x128xf32>
    %c0_98 = arith.constant 0 : index
    %123 = memref.load %arg0[%c0_98] : memref<3xf32, #tpu.memory_space<smem>>
    %c3_99 = arith.constant 3 : index
    %c0_100 = arith.constant 0 : index
    %c0_101 = arith.constant 0 : index
    %c0_102 = arith.constant 0 : index
    %124 = vector.load %arg3[%c3_99, %c0_100, %c0_101, %c0_102] : memref<8x3x1x128xf32, #tpu.memory_space<vmem>>, vector<1x1x1x128xf32>
    %125 = vector.shape_cast %124 : vector<1x1x1x128xf32> to vector<1x128xf32>
    %126 = vector.broadcast %123 : f32 to vector<1x128xf32>
    %127 = arith.mulf %126, %125 : vector<1x128xf32>
    %c1_103 = arith.constant 1 : index
    %128 = memref.load %arg0[%c1_103] : memref<3xf32, #tpu.memory_space<smem>>
    %c3_104 = arith.constant 3 : index
    %c1_105 = arith.constant 1 : index
    %c0_106 = arith.constant 0 : index
    %c0_107 = arith.constant 0 : index
    %129 = vector.load %arg2[%c3_104, %c1_105, %c0_106, %c0_107] : memref<8x3x128x128xf32, #tpu.memory_space<vmem>>, vector<1x1x128x128xf32>
    %130 = vector.shape_cast %129 : vector<1x1x128x128xf32> to vector<128x128xf32>
    %131 = vector.broadcast %128 : f32 to vector<128x128xf32>
    %132 = arith.mulf %131, %130 : vector<128x128xf32>
    %133 = arith.addf %122, %132 : vector<128x128xf32>
    %c1_108 = arith.constant 1 : index
    %134 = memref.load %arg0[%c1_108] : memref<3xf32, #tpu.memory_space<smem>>
    %c3_109 = arith.constant 3 : index
    %c1_110 = arith.constant 1 : index
    %c0_111 = arith.constant 0 : index
    %c0_112 = arith.constant 0 : index
    %135 = vector.load %arg3[%c3_109, %c1_110, %c0_111, %c0_112] : memref<8x3x1x128xf32, #tpu.memory_space<vmem>>, vector<1x1x1x128xf32>
    %136 = vector.shape_cast %135 : vector<1x1x1x128xf32> to vector<1x128xf32>
    %137 = vector.broadcast %134 : f32 to vector<1x128xf32>
    %138 = arith.mulf %137, %136 : vector<1x128xf32>
    %139 = arith.addf %127, %138 : vector<1x128xf32>
    %c2_113 = arith.constant 2 : index
    %140 = memref.load %arg0[%c2_113] : memref<3xf32, #tpu.memory_space<smem>>
    %c3_114 = arith.constant 3 : index
    %c2_115 = arith.constant 2 : index
    %c0_116 = arith.constant 0 : index
    %c0_117 = arith.constant 0 : index
    %141 = vector.load %arg2[%c3_114, %c2_115, %c0_116, %c0_117] : memref<8x3x128x128xf32, #tpu.memory_space<vmem>>, vector<1x1x128x128xf32>
    %142 = vector.shape_cast %141 : vector<1x1x128x128xf32> to vector<128x128xf32>
    %143 = vector.broadcast %140 : f32 to vector<128x128xf32>
    %144 = arith.mulf %143, %142 : vector<128x128xf32>
    %145 = arith.addf %133, %144 : vector<128x128xf32>
    %c2_118 = arith.constant 2 : index
    %146 = memref.load %arg0[%c2_118] : memref<3xf32, #tpu.memory_space<smem>>
    %c3_119 = arith.constant 3 : index
    %c2_120 = arith.constant 2 : index
    %c0_121 = arith.constant 0 : index
    %c0_122 = arith.constant 0 : index
    %147 = vector.load %arg3[%c3_119, %c2_120, %c0_121, %c0_122] : memref<8x3x1x128xf32, #tpu.memory_space<vmem>>, vector<1x1x1x128xf32>
    %148 = vector.shape_cast %147 : vector<1x1x1x128xf32> to vector<1x128xf32>
    %149 = vector.broadcast %146 : f32 to vector<1x128xf32>
    %150 = arith.mulf %149, %148 : vector<1x128xf32>
    %151 = arith.addf %139, %150 : vector<1x128xf32>
    %cst_123 = arith.constant dense<0.000000e+00> : vector<8x128xf32>
    %152 = tpu.matmul %117, %145, %cst_123 {dimension_numbers = #tpu.dot_dimension_numbers<[1], [0], [0], [1], [0, 0, 1, 1], [], []>} : vector<8x128xf32>, vector<128x128xf32>, vector<8x128xf32> -> vector<8x128xf32>
    %153 = vector.broadcast %151 : vector<1x128xf32> to vector<8x128xf32>
    %154 = arith.addf %152, %153 : vector<8x128xf32>
    %cst_124 = arith.constant 0.000000e+00 : f32
    %155 = vector.broadcast %cst_124 : f32 to vector<8x128xf32>
    %156 = arith.maximumf %154, %155 : vector<8x128xf32>
    %c0_125 = arith.constant 0 : index
    %157 = memref.load %arg0[%c0_125] : memref<3xf32, #tpu.memory_space<smem>>
    %c4 = arith.constant 4 : index
    %c0_126 = arith.constant 0 : index
    %c0_127 = arith.constant 0 : index
    %c0_128 = arith.constant 0 : index
    %158 = vector.load %arg2[%c4, %c0_126, %c0_127, %c0_128] : memref<8x3x128x128xf32, #tpu.memory_space<vmem>>, vector<1x1x128x128xf32>
    %159 = vector.shape_cast %158 : vector<1x1x128x128xf32> to vector<128x128xf32>
    %160 = vector.broadcast %157 : f32 to vector<128x128xf32>
    %161 = arith.mulf %160, %159 : vector<128x128xf32>
    %c0_129 = arith.constant 0 : index
    %162 = memref.load %arg0[%c0_129] : memref<3xf32, #tpu.memory_space<smem>>
    %c4_130 = arith.constant 4 : index
    %c0_131 = arith.constant 0 : index
    %c0_132 = arith.constant 0 : index
    %c0_133 = arith.constant 0 : index
    %163 = vector.load %arg3[%c4_130, %c0_131, %c0_132, %c0_133] : memref<8x3x1x128xf32, #tpu.memory_space<vmem>>, vector<1x1x1x128xf32>
    %164 = vector.shape_cast %163 : vector<1x1x1x128xf32> to vector<1x128xf32>
    %165 = vector.broadcast %162 : f32 to vector<1x128xf32>
    %166 = arith.mulf %165, %164 : vector<1x128xf32>
    %c1_134 = arith.constant 1 : index
    %167 = memref.load %arg0[%c1_134] : memref<3xf32, #tpu.memory_space<smem>>
    %c4_135 = arith.constant 4 : index
    %c1_136 = arith.constant 1 : index
    %c0_137 = arith.constant 0 : index
    %c0_138 = arith.constant 0 : index
    %168 = vector.load %arg2[%c4_135, %c1_136, %c0_137, %c0_138] : memref<8x3x128x128xf32, #tpu.memory_space<vmem>>, vector<1x1x128x128xf32>
    %169 = vector.shape_cast %168 : vector<1x1x128x128xf32> to vector<128x128xf32>
    %170 = vector.broadcast %167 : f32 to vector<128x128xf32>
    %171 = arith.mulf %170, %169 : vector<128x128xf32>
    %172 = arith.addf %161, %171 : vector<128x128xf32>
    %c1_139 = arith.constant 1 : index
    %173 = memref.load %arg0[%c1_139] : memref<3xf32, #tpu.memory_space<smem>>
    %c4_140 = arith.constant 4 : index
    %c1_141 = arith.constant 1 : index
    %c0_142 = arith.constant 0 : index
    %c0_143 = arith.constant 0 : index
    %174 = vector.load %arg3[%c4_140, %c1_141, %c0_142, %c0_143] : memref<8x3x1x128xf32, #tpu.memory_space<vmem>>, vector<1x1x1x128xf32>
    %175 = vector.shape_cast %174 : vector<1x1x1x128xf32> to vector<1x128xf32>
    %176 = vector.broadcast %173 : f32 to vector<1x128xf32>
    %177 = arith.mulf %176, %175 : vector<1x128xf32>
    %178 = arith.addf %166, %177 : vector<1x128xf32>
    %c2_144 = arith.constant 2 : index
    %179 = memref.load %arg0[%c2_144] : memref<3xf32, #tpu.memory_space<smem>>
    %c4_145 = arith.constant 4 : index
    %c2_146 = arith.constant 2 : index
    %c0_147 = arith.constant 0 : index
    %c0_148 = arith.constant 0 : index
    %180 = vector.load %arg2[%c4_145, %c2_146, %c0_147, %c0_148] : memref<8x3x128x128xf32, #tpu.memory_space<vmem>>, vector<1x1x128x128xf32>
    %181 = vector.shape_cast %180 : vector<1x1x128x128xf32> to vector<128x128xf32>
    %182 = vector.broadcast %179 : f32 to vector<128x128xf32>
    %183 = arith.mulf %182, %181 : vector<128x128xf32>
    %184 = arith.addf %172, %183 : vector<128x128xf32>
    %c2_149 = arith.constant 2 : index
    %185 = memref.load %arg0[%c2_149] : memref<3xf32, #tpu.memory_space<smem>>
    %c4_150 = arith.constant 4 : index
    %c2_151 = arith.constant 2 : index
    %c0_152 = arith.constant 0 : index
    %c0_153 = arith.constant 0 : index
    %186 = vector.load %arg3[%c4_150, %c2_151, %c0_152, %c0_153] : memref<8x3x1x128xf32, #tpu.memory_space<vmem>>, vector<1x1x1x128xf32>
    %187 = vector.shape_cast %186 : vector<1x1x1x128xf32> to vector<1x128xf32>
    %188 = vector.broadcast %185 : f32 to vector<1x128xf32>
    %189 = arith.mulf %188, %187 : vector<1x128xf32>
    %190 = arith.addf %178, %189 : vector<1x128xf32>
    %cst_154 = arith.constant dense<0.000000e+00> : vector<8x128xf32>
    %191 = tpu.matmul %156, %184, %cst_154 {dimension_numbers = #tpu.dot_dimension_numbers<[1], [0], [0], [1], [0, 0, 1, 1], [], []>} : vector<8x128xf32>, vector<128x128xf32>, vector<8x128xf32> -> vector<8x128xf32>
    %192 = vector.broadcast %190 : vector<1x128xf32> to vector<8x128xf32>
    %193 = arith.addf %191, %192 : vector<8x128xf32>
    %cst_155 = arith.constant 0.000000e+00 : f32
    %194 = vector.broadcast %cst_155 : f32 to vector<8x128xf32>
    %195 = arith.maximumf %193, %194 : vector<8x128xf32>
    %c0_156 = arith.constant 0 : index
    %196 = memref.load %arg0[%c0_156] : memref<3xf32, #tpu.memory_space<smem>>
    %c5 = arith.constant 5 : index
    %c0_157 = arith.constant 0 : index
    %c0_158 = arith.constant 0 : index
    %c0_159 = arith.constant 0 : index
    %197 = vector.load %arg2[%c5, %c0_157, %c0_158, %c0_159] : memref<8x3x128x128xf32, #tpu.memory_space<vmem>>, vector<1x1x128x128xf32>
    %198 = vector.shape_cast %197 : vector<1x1x128x128xf32> to vector<128x128xf32>
    %199 = vector.broadcast %196 : f32 to vector<128x128xf32>
    %200 = arith.mulf %199, %198 : vector<128x128xf32>
    %c0_160 = arith.constant 0 : index
    %201 = memref.load %arg0[%c0_160] : memref<3xf32, #tpu.memory_space<smem>>
    %c5_161 = arith.constant 5 : index
    %c0_162 = arith.constant 0 : index
    %c0_163 = arith.constant 0 : index
    %c0_164 = arith.constant 0 : index
    %202 = vector.load %arg3[%c5_161, %c0_162, %c0_163, %c0_164] : memref<8x3x1x128xf32, #tpu.memory_space<vmem>>, vector<1x1x1x128xf32>
    %203 = vector.shape_cast %202 : vector<1x1x1x128xf32> to vector<1x128xf32>
    %204 = vector.broadcast %201 : f32 to vector<1x128xf32>
    %205 = arith.mulf %204, %203 : vector<1x128xf32>
    %c1_165 = arith.constant 1 : index
    %206 = memref.load %arg0[%c1_165] : memref<3xf32, #tpu.memory_space<smem>>
    %c5_166 = arith.constant 5 : index
    %c1_167 = arith.constant 1 : index
    %c0_168 = arith.constant 0 : index
    %c0_169 = arith.constant 0 : index
    %207 = vector.load %arg2[%c5_166, %c1_167, %c0_168, %c0_169] : memref<8x3x128x128xf32, #tpu.memory_space<vmem>>, vector<1x1x128x128xf32>
    %208 = vector.shape_cast %207 : vector<1x1x128x128xf32> to vector<128x128xf32>
    %209 = vector.broadcast %206 : f32 to vector<128x128xf32>
    %210 = arith.mulf %209, %208 : vector<128x128xf32>
    %211 = arith.addf %200, %210 : vector<128x128xf32>
    %c1_170 = arith.constant 1 : index
    %212 = memref.load %arg0[%c1_170] : memref<3xf32, #tpu.memory_space<smem>>
    %c5_171 = arith.constant 5 : index
    %c1_172 = arith.constant 1 : index
    %c0_173 = arith.constant 0 : index
    %c0_174 = arith.constant 0 : index
    %213 = vector.load %arg3[%c5_171, %c1_172, %c0_173, %c0_174] : memref<8x3x1x128xf32, #tpu.memory_space<vmem>>, vector<1x1x1x128xf32>
    %214 = vector.shape_cast %213 : vector<1x1x1x128xf32> to vector<1x128xf32>
    %215 = vector.broadcast %212 : f32 to vector<1x128xf32>
    %216 = arith.mulf %215, %214 : vector<1x128xf32>
    %217 = arith.addf %205, %216 : vector<1x128xf32>
    %c2_175 = arith.constant 2 : index
    %218 = memref.load %arg0[%c2_175] : memref<3xf32, #tpu.memory_space<smem>>
    %c5_176 = arith.constant 5 : index
    %c2_177 = arith.constant 2 : index
    %c0_178 = arith.constant 0 : index
    %c0_179 = arith.constant 0 : index
    %219 = vector.load %arg2[%c5_176, %c2_177, %c0_178, %c0_179] : memref<8x3x128x128xf32, #tpu.memory_space<vmem>>, vector<1x1x128x128xf32>
    %220 = vector.shape_cast %219 : vector<1x1x128x128xf32> to vector<128x128xf32>
    %221 = vector.broadcast %218 : f32 to vector<128x128xf32>
    %222 = arith.mulf %221, %220 : vector<128x128xf32>
    %223 = arith.addf %211, %222 : vector<128x128xf32>
    %c2_180 = arith.constant 2 : index
    %224 = memref.load %arg0[%c2_180] : memref<3xf32, #tpu.memory_space<smem>>
    %c5_181 = arith.constant 5 : index
    %c2_182 = arith.constant 2 : index
    %c0_183 = arith.constant 0 : index
    %c0_184 = arith.constant 0 : index
    %225 = vector.load %arg3[%c5_181, %c2_182, %c0_183, %c0_184] : memref<8x3x1x128xf32, #tpu.memory_space<vmem>>, vector<1x1x1x128xf32>
    %226 = vector.shape_cast %225 : vector<1x1x1x128xf32> to vector<1x128xf32>
    %227 = vector.broadcast %224 : f32 to vector<1x128xf32>
    %228 = arith.mulf %227, %226 : vector<1x128xf32>
    %229 = arith.addf %217, %228 : vector<1x128xf32>
    %cst_185 = arith.constant dense<0.000000e+00> : vector<8x128xf32>
    %230 = tpu.matmul %195, %223, %cst_185 {dimension_numbers = #tpu.dot_dimension_numbers<[1], [0], [0], [1], [0, 0, 1, 1], [], []>} : vector<8x128xf32>, vector<128x128xf32>, vector<8x128xf32> -> vector<8x128xf32>
    %231 = vector.broadcast %229 : vector<1x128xf32> to vector<8x128xf32>
    %232 = arith.addf %230, %231 : vector<8x128xf32>
    %cst_186 = arith.constant 0.000000e+00 : f32
    %233 = vector.broadcast %cst_186 : f32 to vector<8x128xf32>
    %234 = arith.maximumf %232, %233 : vector<8x128xf32>
    %c0_187 = arith.constant 0 : index
    %235 = memref.load %arg0[%c0_187] : memref<3xf32, #tpu.memory_space<smem>>
    %c6 = arith.constant 6 : index
    %c0_188 = arith.constant 0 : index
    %c0_189 = arith.constant 0 : index
    %c0_190 = arith.constant 0 : index
    %236 = vector.load %arg2[%c6, %c0_188, %c0_189, %c0_190] : memref<8x3x128x128xf32, #tpu.memory_space<vmem>>, vector<1x1x128x128xf32>
    %237 = vector.shape_cast %236 : vector<1x1x128x128xf32> to vector<128x128xf32>
    %238 = vector.broadcast %235 : f32 to vector<128x128xf32>
    %239 = arith.mulf %238, %237 : vector<128x128xf32>
    %c0_191 = arith.constant 0 : index
    %240 = memref.load %arg0[%c0_191] : memref<3xf32, #tpu.memory_space<smem>>
    %c6_192 = arith.constant 6 : index
    %c0_193 = arith.constant 0 : index
    %c0_194 = arith.constant 0 : index
    %c0_195 = arith.constant 0 : index
    %241 = vector.load %arg3[%c6_192, %c0_193, %c0_194, %c0_195] : memref<8x3x1x128xf32, #tpu.memory_space<vmem>>, vector<1x1x1x128xf32>
    %242 = vector.shape_cast %241 : vector<1x1x1x128xf32> to vector<1x128xf32>
    %243 = vector.broadcast %240 : f32 to vector<1x128xf32>
    %244 = arith.mulf %243, %242 : vector<1x128xf32>
    %c1_196 = arith.constant 1 : index
    %245 = memref.load %arg0[%c1_196] : memref<3xf32, #tpu.memory_space<smem>>
    %c6_197 = arith.constant 6 : index
    %c1_198 = arith.constant 1 : index
    %c0_199 = arith.constant 0 : index
    %c0_200 = arith.constant 0 : index
    %246 = vector.load %arg2[%c6_197, %c1_198, %c0_199, %c0_200] : memref<8x3x128x128xf32, #tpu.memory_space<vmem>>, vector<1x1x128x128xf32>
    %247 = vector.shape_cast %246 : vector<1x1x128x128xf32> to vector<128x128xf32>
    %248 = vector.broadcast %245 : f32 to vector<128x128xf32>
    %249 = arith.mulf %248, %247 : vector<128x128xf32>
    %250 = arith.addf %239, %249 : vector<128x128xf32>
    %c1_201 = arith.constant 1 : index
    %251 = memref.load %arg0[%c1_201] : memref<3xf32, #tpu.memory_space<smem>>
    %c6_202 = arith.constant 6 : index
    %c1_203 = arith.constant 1 : index
    %c0_204 = arith.constant 0 : index
    %c0_205 = arith.constant 0 : index
    %252 = vector.load %arg3[%c6_202, %c1_203, %c0_204, %c0_205] : memref<8x3x1x128xf32, #tpu.memory_space<vmem>>, vector<1x1x1x128xf32>
    %253 = vector.shape_cast %252 : vector<1x1x1x128xf32> to vector<1x128xf32>
    %254 = vector.broadcast %251 : f32 to vector<1x128xf32>
    %255 = arith.mulf %254, %253 : vector<1x128xf32>
    %256 = arith.addf %244, %255 : vector<1x128xf32>
    %c2_206 = arith.constant 2 : index
    %257 = memref.load %arg0[%c2_206] : memref<3xf32, #tpu.memory_space<smem>>
    %c6_207 = arith.constant 6 : index
    %c2_208 = arith.constant 2 : index
    %c0_209 = arith.constant 0 : index
    %c0_210 = arith.constant 0 : index
    %258 = vector.load %arg2[%c6_207, %c2_208, %c0_209, %c0_210] : memref<8x3x128x128xf32, #tpu.memory_space<vmem>>, vector<1x1x128x128xf32>
    %259 = vector.shape_cast %258 : vector<1x1x128x128xf32> to vector<128x128xf32>
    %260 = vector.broadcast %257 : f32 to vector<128x128xf32>
    %261 = arith.mulf %260, %259 : vector<128x128xf32>
    %262 = arith.addf %250, %261 : vector<128x128xf32>
    %c2_211 = arith.constant 2 : index
    %263 = memref.load %arg0[%c2_211] : memref<3xf32, #tpu.memory_space<smem>>
    %c6_212 = arith.constant 6 : index
    %c2_213 = arith.constant 2 : index
    %c0_214 = arith.constant 0 : index
    %c0_215 = arith.constant 0 : index
    %264 = vector.load %arg3[%c6_212, %c2_213, %c0_214, %c0_215] : memref<8x3x1x128xf32, #tpu.memory_space<vmem>>, vector<1x1x1x128xf32>
    %265 = vector.shape_cast %264 : vector<1x1x1x128xf32> to vector<1x128xf32>
    %266 = vector.broadcast %263 : f32 to vector<1x128xf32>
    %267 = arith.mulf %266, %265 : vector<1x128xf32>
    %268 = arith.addf %256, %267 : vector<1x128xf32>
    %cst_216 = arith.constant dense<0.000000e+00> : vector<8x128xf32>
    %269 = tpu.matmul %234, %262, %cst_216 {dimension_numbers = #tpu.dot_dimension_numbers<[1], [0], [0], [1], [0, 0, 1, 1], [], []>} : vector<8x128xf32>, vector<128x128xf32>, vector<8x128xf32> -> vector<8x128xf32>
    %270 = vector.broadcast %268 : vector<1x128xf32> to vector<8x128xf32>
    %271 = arith.addf %269, %270 : vector<8x128xf32>
    %cst_217 = arith.constant 0.000000e+00 : f32
    %272 = vector.broadcast %cst_217 : f32 to vector<8x128xf32>
    %273 = arith.maximumf %271, %272 : vector<8x128xf32>
    %c0_218 = arith.constant 0 : index
    %274 = memref.load %arg0[%c0_218] : memref<3xf32, #tpu.memory_space<smem>>
    %c7 = arith.constant 7 : index
    %c0_219 = arith.constant 0 : index
    %c0_220 = arith.constant 0 : index
    %c0_221 = arith.constant 0 : index
    %275 = vector.load %arg2[%c7, %c0_219, %c0_220, %c0_221] : memref<8x3x128x128xf32, #tpu.memory_space<vmem>>, vector<1x1x128x128xf32>
    %276 = vector.shape_cast %275 : vector<1x1x128x128xf32> to vector<128x128xf32>
    %277 = vector.broadcast %274 : f32 to vector<128x128xf32>
    %278 = arith.mulf %277, %276 : vector<128x128xf32>
    %c0_222 = arith.constant 0 : index
    %279 = memref.load %arg0[%c0_222] : memref<3xf32, #tpu.memory_space<smem>>
    %c7_223 = arith.constant 7 : index
    %c0_224 = arith.constant 0 : index
    %c0_225 = arith.constant 0 : index
    %c0_226 = arith.constant 0 : index
    %280 = vector.load %arg3[%c7_223, %c0_224, %c0_225, %c0_226] : memref<8x3x1x128xf32, #tpu.memory_space<vmem>>, vector<1x1x1x128xf32>
    %281 = vector.shape_cast %280 : vector<1x1x1x128xf32> to vector<1x128xf32>
    %282 = vector.broadcast %279 : f32 to vector<1x128xf32>
    %283 = arith.mulf %282, %281 : vector<1x128xf32>
    %c1_227 = arith.constant 1 : index
    %284 = memref.load %arg0[%c1_227] : memref<3xf32, #tpu.memory_space<smem>>
    %c7_228 = arith.constant 7 : index
    %c1_229 = arith.constant 1 : index
    %c0_230 = arith.constant 0 : index
    %c0_231 = arith.constant 0 : index
    %285 = vector.load %arg2[%c7_228, %c1_229, %c0_230, %c0_231] : memref<8x3x128x128xf32, #tpu.memory_space<vmem>>, vector<1x1x128x128xf32>
    %286 = vector.shape_cast %285 : vector<1x1x128x128xf32> to vector<128x128xf32>
    %287 = vector.broadcast %284 : f32 to vector<128x128xf32>
    %288 = arith.mulf %287, %286 : vector<128x128xf32>
    %289 = arith.addf %278, %288 : vector<128x128xf32>
    %c1_232 = arith.constant 1 : index
    %290 = memref.load %arg0[%c1_232] : memref<3xf32, #tpu.memory_space<smem>>
    %c7_233 = arith.constant 7 : index
    %c1_234 = arith.constant 1 : index
    %c0_235 = arith.constant 0 : index
    %c0_236 = arith.constant 0 : index
    %291 = vector.load %arg3[%c7_233, %c1_234, %c0_235, %c0_236] : memref<8x3x1x128xf32, #tpu.memory_space<vmem>>, vector<1x1x1x128xf32>
    %292 = vector.shape_cast %291 : vector<1x1x1x128xf32> to vector<1x128xf32>
    %293 = vector.broadcast %290 : f32 to vector<1x128xf32>
    %294 = arith.mulf %293, %292 : vector<1x128xf32>
    %295 = arith.addf %283, %294 : vector<1x128xf32>
    %c2_237 = arith.constant 2 : index
    %296 = memref.load %arg0[%c2_237] : memref<3xf32, #tpu.memory_space<smem>>
    %c7_238 = arith.constant 7 : index
    %c2_239 = arith.constant 2 : index
    %c0_240 = arith.constant 0 : index
    %c0_241 = arith.constant 0 : index
    %297 = vector.load %arg2[%c7_238, %c2_239, %c0_240, %c0_241] : memref<8x3x128x128xf32, #tpu.memory_space<vmem>>, vector<1x1x128x128xf32>
    %298 = vector.shape_cast %297 : vector<1x1x128x128xf32> to vector<128x128xf32>
    %299 = vector.broadcast %296 : f32 to vector<128x128xf32>
    %300 = arith.mulf %299, %298 : vector<128x128xf32>
    %301 = arith.addf %289, %300 : vector<128x128xf32>
    %c2_242 = arith.constant 2 : index
    %302 = memref.load %arg0[%c2_242] : memref<3xf32, #tpu.memory_space<smem>>
    %c7_243 = arith.constant 7 : index
    %c2_244 = arith.constant 2 : index
    %c0_245 = arith.constant 0 : index
    %c0_246 = arith.constant 0 : index
    %303 = vector.load %arg3[%c7_243, %c2_244, %c0_245, %c0_246] : memref<8x3x1x128xf32, #tpu.memory_space<vmem>>, vector<1x1x1x128xf32>
    %304 = vector.shape_cast %303 : vector<1x1x1x128xf32> to vector<1x128xf32>
    %305 = vector.broadcast %302 : f32 to vector<1x128xf32>
    %306 = arith.mulf %305, %304 : vector<1x128xf32>
    %307 = arith.addf %295, %306 : vector<1x128xf32>
    %cst_247 = arith.constant dense<0.000000e+00> : vector<8x128xf32>
    %308 = tpu.matmul %273, %301, %cst_247 {dimension_numbers = #tpu.dot_dimension_numbers<[1], [0], [0], [1], [0, 0, 1, 1], [], []>} : vector<8x128xf32>, vector<128x128xf32>, vector<8x128xf32> -> vector<8x128xf32>
    %309 = vector.broadcast %307 : vector<1x128xf32> to vector<8x128xf32>
    %310 = arith.addf %308, %309 : vector<8x128xf32>
    %c0_248 = arith.constant 0 : index
    %c0_249 = arith.constant 0 : index
    %311 = vector.load %arg4[%c0_248, %c0_249] : memref<8x128xf32, #tpu.memory_space<vmem>>, vector<8x128xf32>
    tpu.vector_store %arg4[%c0_248, %c0_249], %310 {strides = array<i32>} : memref<8x128xf32, #tpu.memory_space<vmem>>, vector<8x128xf32>,
    return
  }
}

</mosaic_0001>

<bundles_post_ra>
// kernel: tpu_custom_call.1
= control target key start
LH: loop header
LB: loop body
LE: loop exit
PB: predicated region body
PF: predicated region fallthrough
CT: control target
= control target key end

     0   :  { %9 = vsyncpa [#allocation5], 0  ;;  %s3208_s0 = inlined_call_operand.hbm [shape: f32[3], index: 0, kind: input, shape index: {}]   ;;  %s3209_s1 = inlined_call_operand.hbm [shape: f32[8,128], index: 1, kind: input, shape index: {}]   ;;  %s3210_s2 = inlined_call_operand.hbm [shape: f32[8,3,128,128], index: 2, kind: input, shape index: {}]   ;;  %s3211_s3 = inlined_call_operand.hbm [shape: f32[8,3,1,128], index: 3, kind: input, shape index: {}]   ;;  %s3212_s4 = inlined_call_operand.hbm [shape: f32[8,128], index: 4, kind: output, shape index: {}]  }
   0x1   :  { %10 = vsyncpa [#allocation3], 0 }
   0x2   :  { %11 = vsyncpa [#allocation8], 0 }
   0x3   :  { %12 = vsyncpa [#allocation4], 0  ;;  %s2570_s15 = smov [#allocation7]   ;;  %s2464_s19 = scalar_lea.hbm %s3210_s2, 49152 }
   0x4   :  { %s36_s16 = sshll.u32 %s2570_s15, 4  ;;  %p2465_p0 = scmp.ne.s32.totalorder %s3210_s2, %s2464_s19  ;;  %s37_s16 = int_to_ptr.vmem [resolvable:$true] %s36_s16 }
   0x5   :  { %p2468_p1 = scmp.lt.u32.totalorder %s2464_s19, %s3210_s2 }
   0x7   :  { %p2470_p2 = pnand %p2468_p1, %p2465_p0 }
   0x9   :  { %2473 = shalt.err (!%p2470_p2)
}
   0xa   :  { %s2474_s24 = scalar_lea.vmem %s37_s16, 49152  ;;  %p2479_p4 = scmp.lt.s32.totalorder %s37_s16, %s37_s16 }
   0xb   :  { %p2475_p3 = scmp.ne.s32.totalorder %s37_s16, %s2474_s24  ;;  %p2480_p5 = scmp.lt.s32.totalorder %s2474_s24, %s2474_s24 }
   0xd   :  { %p2481_p6 = por %p2480_p5, %p2479_p4 }
   0xf   :  { %p2482_p7 = pnand %p2481_p6, %p2475_p3 }
  0x11   :  { %2485 = shalt.err (!%p2482_p7)
}
  0x12   :  { %s2571_s25 = smov 128   ;;  %s2572_s26 = smov 8  }
  0x13   :  { %42 = dma.hbm_to_vmem [thread:$0]  %s3210_s2, 49152, %s37_s16, [#allocation8], %s2571_s25, %s2571_s25, %s2572_s26  }
  0x14   :  { %s2486_s5 = scalar_lea.hbm %s3208_s0, 16 }
  0x15   :  { %p2487_p8 = scmp.ne.s32.totalorder %s3208_s0, %s2486_s5  ;;  %p2490_p9 = scmp.lt.u32.totalorder %s2486_s5, %s3208_s0 }
  0x17   :  { %p2492_p10 = pnand %p2490_p9, %p2487_p8 }
  0x19   :  { %2495 = shalt.err (!%p2492_p10)
}
  0x1a   :  { %s2573_s10 = smov [#allocation2]   ;;  %s2574_s2 = smov [#allocation6]  }
  0x1b   :  { %20 = dma.hbm_to_smem %s3208_s0, 16, %s2573_s10, [#allocation5]  }
  0x1c   :  { %s27_s13 = sshll.u32 %s2574_s2, 4  ;;  %s2575_s14 = smov [#allocation9]   ;;  %s28_s13 = int_to_ptr.vmem [resolvable:$true] %s27_s13 }
  0x1d   :  { %s48_s15 = sshll.u32 %s2575_s14, 4  ;;  %s2496_s18 = scalar_lea.hbm %s3209_s1, 128  ;;  %s2631_s15 = int_to_ptr.vmem [resolvable:$true] %s48_s15 }
  0x1e   :  { %p2497_p11 = scmp.ne.s32.totalorder %s3209_s1, %s2496_s18  ;;  %p2500_p12 = scmp.lt.u32.totalorder %s2496_s18, %s3209_s1 }
  0x20   :  { %p2502_p13 = pnand %p2500_p12, %p2497_p11 }
  0x22   :  { %2505 = shalt.err (!%p2502_p13)
}
  0x23   :  { %s2506_s0 = scalar_lea.vmem %s28_s13, 128  ;;  %p2511_p1 = scmp.lt.s32.totalorder %s28_s13, %s28_s13 }
  0x24   :  { %p2507_p0 = scmp.ne.s32.totalorder %s28_s13, %s2506_s0  ;;  %p2512_p2 = scmp.lt.s32.totalorder %s2506_s0, %s2506_s0 }
  0x26   :  { %p2513_p3 = por %p2512_p2, %p2511_p1 }
  0x28   :  { %p2514_p4 = pnand %p2513_p3, %p2507_p0 }
  0x2a   :  { %2517 = shalt.err (!%p2514_p4)
}
  0x2b   :  { %30 = dma.hbm_to_vmem [thread:$0]  %s3209_s1, 128, %s28_s13, [#allocation3]  }
  0x2c   :  { %s2518_s27 = scalar_lea.hbm %s3211_s3, 384 }
  0x2d   :  { %p2519_p5 = scmp.ne.s32.totalorder %s3211_s3, %s2518_s27  ;;  %p2522_p6 = scmp.lt.u32.totalorder %s2518_s27, %s3211_s3 }
  0x2f   :  { %p2524_p7 = pnand %p2522_p6, %p2519_p5 }
  0x31   :  { %2527 = shalt.err (!%p2524_p7)
}
  0x32   :  { %s2528_s6 = scalar_lea.vmem %s2631_s15, 384  ;;  %p2533_p9 = scmp.lt.s32.totalorder %s2631_s15, %s2631_s15 }
  0x33   :  { %p2529_p8 = scmp.ne.s32.totalorder %s2631_s15, %s2528_s6  ;;  %p2534_p10 = scmp.lt.s32.totalorder %s2528_s6, %s2528_s6 }
  0x35   :  { %p2535_p11 = por %p2534_p10, %p2533_p9 }
  0x37   :  { %p2536_p12 = pnand %p2535_p11, %p2529_p8 }
  0x39   :  { %2539 = shalt.err (!%p2536_p12)
}
  0x3a   :  { %s2576_s1 = smov 16   ;;  %s2577_s7 = smov 1  }
  0x3b   :  { %54 = dma.hbm_to_vmem [thread:$0]  %s3211_s3, 384, %s2631_s15, [#allocation8], %s2576_s1, %s2576_s1, %s2577_s7  }
  0x3c   :  { %2562 = dma.done.wait [#allocation5], 16  }
  0x3d   :  { %2563 = vsyncadd [#allocation5], 4294967280 }
  0x3e   :  { %2564 = dma.done.wait [#allocation3], 128  }
  0x3f   :  { %2565 = vsyncadd [#allocation3], 4294967168 }
  0x40   :  { %2566 = dma.done.wait [#allocation8], 49536  }
  0x41   :  { %2567 = vsyncadd [#allocation8], 4294917760 }
  0x42   :  { %67 = sfence }
  0x43   :  { %s69_s10 = sld [smem:[#allocation2]]  ;;  %v2578_v0 = vmov 0.0|0.0   ;;  %s1842_s11 = sld [smem:[#allocation2 + $0x1]]  ;;  %v70_v1 = vld [vmem:[#allocation7] sm:$0xff]  ;;  %vm2579_vm0 = vmmov 0   ;;  %v2580_v2 = vmov 0.0  }
  0x44   :  { %2260 = vmatprep.subr.bf16.mxu0 %v2578_v0  ;;  %s1843_s12 = sld [smem:[#allocation2 + $0x2]]  ;;  %2284 = vmatprep.subr.bf16.mxu1 %v2578_v0  ;;  %v71_v3 = vld [vmem:[#allocation7 + $0x8] sm:$0xff]  ;;  %v107_v4 = vld [vmem:[#allocation7 + $0x80] sm:$0xff]  ;;  %v72_v8 = vld [vmem:[#allocation7 + $0x10] sm:$0xff]  ;;  %s2581_s3 = smov [#allocation10]  }
  0x45   :  { %2012 = vmatprep.mubr.msk.f32.mxu0 %vm2579_vm0, %v2580_v2  ;;  %2047 = vmatprep.mubr.msk.f32.mxu1 %vm2579_vm0, %v2580_v2  ;;  %v108_v5 = vld [vmem:[#allocation7 + $0x88] sm:$0xff]  ;;  %v162_v6 = vld [vmem:[#allocation7 + $0x100] sm:$0xff]  ;;  %v73_v10 = vld [vmem:[#allocation7 + $0x18] sm:$0xff]  ;;  %s1831_s2 = sshll.u32 %s2581_s3, 4  ;;  %s1832_s2 = int_to_ptr.vmem [resolvable:$true] %s1831_s2 }
  0x46   :  { %v163_v7 = vld [vmem:[#allocation7 + $0x108] sm:$0xff]  ;;  %v109_v11 = vld [vmem:[#allocation7 + $0x90] sm:$0xff]  ;;  %v110_v12 = vld [vmem:[#allocation7 + $0x98] sm:$0xff]  ;;  %s2540_s13 = scalar_lea.vmem %s1832_s2, 128  ;;  %p2545_p0 = scmp.lt.s32.totalorder %s1832_s2, %s1832_s2 }
  0x47   :  { %v164_v17 = vld [vmem:[#allocation7 + $0x110] sm:$0xff]  ;;  %v165_v18 = vld [vmem:[#allocation7 + $0x118] sm:$0xff]  ;;  %v74_v23 = vld [vmem:[#allocation7 + $0x20] sm:$0xff]  ;;  %p2541_p13 = scmp.ne.s32.totalorder %s1832_s2, %s2540_s13  ;;  %p2546_p1 = scmp.lt.s32.totalorder %s2540_s13, %s2540_s13 }
  0x48   :  { %v75_v24 = vld [vmem:[#allocation7 + $0x28] sm:$0xff]  ;;  %v111_v29 = vld [vmem:[#allocation7 + $0xa0] sm:$0xff]  ;;  %v76_v41 = vld [vmem:[#allocation7 + $0x30] sm:$0xff] }
  0x49   :  { %v2668_v9 = vstv %s69_s10  ;;  %v2672_v15 = vstv %s1842_s11  ;;  %v112_v30 = vld [vmem:[#allocation7 + $0xa8] sm:$0xff]  ;;  %v166_v35 = vld [vmem:[#allocation7 + $0x120] sm:$0xff]  ;;  %v77_v46 = vld [vmem:[#allocation7 + $0x38] sm:$0xff]  ;;  %p2547_p2 = por %p2546_p1, %p2545_p0 }
  0x4a   :  { %v87_v13 = vmul.f32 %v2668_v9, %v70_v1  ;;  %v88_v14 = vmul.f32 %v2668_v9, %v71_v3  ;;  %v2674_v16 = vstv %s1843_s12  ;;  %v124_v19 = vmul.f32 %v2672_v15, %v107_v4  ;;  %v167_v36 = vld [vmem:[#allocation7 + $0x128] sm:$0xff]  ;;  %v113_v47 = vld [vmem:[#allocation7 + $0xb0] sm:$0xff]  ;;  %v114_v48 = vld [vmem:[#allocation7 + $0xb8] sm:$0xff] }
  0x4b   :  { %v125_v20 = vmul.f32 %v2672_v15, %v108_v5  ;;  %v179_v21 = vmul.f32 %v2674_v16, %v162_v6  ;;  %v180_v22 = vmul.f32 %v2674_v16, %v163_v7  ;;  %v89_v25 = vmul.f32 %v2668_v9, %v72_v8  ;;  %v168_v53 = vld [vmem:[#allocation7 + $0x130] sm:$0xff]  ;;  %v169_v54 = vld [vmem:[#allocation7 + $0x138] sm:$0xff]  ;;  %v78_v59 = vld [vmem:[#allocation7 + $0x40] sm:$0xff]  ;;  %p2548_p3 = pnand %p2547_p2, %p2541_p13 }
  0x4c   :  { %v90_v26 = vmul.f32 %v2668_v9, %v73_v10  ;;  %v126_v27 = vmul.f32 %v2672_v15, %v109_v11  ;;  %v127_v28 = vmul.f32 %v2672_v15, %v110_v12  ;;  %v140_v31 = vadd.f32 %v124_v19, %v87_v13  ;;  %v79_v60 = vld [vmem:[#allocation7 + $0x48] sm:$0xff]  ;;  %v115_v3 = vld [vmem:[#allocation7 + $0xc0] sm:$0xff]  ;;  %v80_v12 = vld [vmem:[#allocation7 + $0x50] sm:$0xff] }
  0x4d   :  { %v141_v32 = vadd.f32 %v125_v20, %v88_v14  ;;  %v181_v33 = vmul.f32 %v2674_v16, %v164_v17  ;;  %v182_v34 = vmul.f32 %v2674_v16, %v165_v18  ;;  %v91_v39 = vmul.f32 %v2668_v9, %v74_v23  ;;  %v116_v4 = vld [vmem:[#allocation7 + $0xc8] sm:$0xff]  ;;  %v170_v5 = vld [vmem:[#allocation7 + $0x140] sm:$0xff]  ;;  %v81_v19 = vld [vmem:[#allocation7 + $0x58] sm:$0xff] }
  0x4e   :  { %v142_v37 = vadd.f32 %v126_v27, %v89_v25  ;;  %v143_v38 = vadd.f32 %v127_v28, %v90_v26  ;;  %v92_v40 = vmul.f32 %v2668_v9, %v75_v24  ;;  %v195_v42 = vadd.f32 %v179_v21, %v140_v31  ;;  %v171_v11 = vld [vmem:[#allocation7 + $0x148] sm:$0xff]  ;;  %v117_v20 = vld [vmem:[#allocation7 + $0xd0] sm:$0xff]  ;;  %v118_v25 = vld [vmem:[#allocation7 + $0xd8] sm:$0xff] }
  0x4f   :  { %v196_v43 = vadd.f32 %v180_v22, %v141_v32  ;;  %v128_v44 = vmul.f32 %v2672_v15, %v111_v29  ;;  %v129_v45 = vmul.f32 %v2672_v15, %v112_v30  ;;  %v183_v51 = vmul.f32 %v2674_v16, %v166_v35  ;;  %v172_v26 = vld [vmem:[#allocation7 + $0x150] sm:$0xff]  ;;  %v173_v27 = vld [vmem:[#allocation7 + $0x158] sm:$0xff]  ;;  %v82_v32 = vld [vmem:[#allocation7 + $0x60] sm:$0xff] }
  0x50   :  { %v197_v49 = vadd.f32 %v181_v33, %v142_v37  ;;  %v198_v50 = vadd.f32 %v182_v34, %v143_v38  ;;  %v184_v52 = vmul.f32 %v2674_v16, %v167_v36  ;;  %v93_v58 = vmul.f32 %v2668_v9, %v76_v41  ;;  %v83_v37 = vld [vmem:[#allocation7 + $0x68] sm:$0xff]  ;;  %v119_v38 = vld [vmem:[#allocation7 + $0xe0] sm:$0xff] }
  0x51   :  { %v2261_v55 = vpack.c.bf16 %v196_v43, %v195_v42  ;;  %v144_v56 = vadd.f32 %v128_v44, %v91_v39  ;;  %v145_v57 = vadd.f32 %v129_v45, %v92_v40  ;;  %v94_v62 = vmul.f32 %v2668_v9, %v77_v46  ;;  %v120_v39 = vld [vmem:[#allocation7 + $0xe8] sm:$0xff]  ;;  %v174_v44 = vld [vmem:[#allocation7 + $0x160] sm:$0xff] }
  0x52   :  { %v2264_v61 = vpack.c.bf16 %v198_v50, %v197_v49  ;;  %v130_v63 = vmul.f32 %v2672_v15, %v113_v47  ;;  %v131_v1 = vmul.f32 %v2672_v15, %v114_v48  ;;  %v185_v8 = vmul.f32 %v2674_v16, %v168_v53  ;;  %v175_v45 = vld [vmem:[#allocation7 + $0x168] sm:$0xff]  ;;  %v84_v50 = vld [vmem:[#allocation7 + $0x70] sm:$0xff] }
  0x53   :  { %2262 = vmatpush3.bf16.msra.mxu0 %v2261_v55  ;;  %v199_v6 = vadd.f32 %v183_v51, %v144_v56  ;;  %v200_v7 = vadd.f32 %v184_v52, %v145_v57  ;;  %v186_v10 = vmul.f32 %v2674_v16, %v169_v54  ;;  %v95_v17 = vmul.f32 %v2668_v9, %v78_v59  ;;  %v85_v51 = vld [vmem:[#allocation7 + $0x78] sm:$0xff]  ;;  %v121_v56 = vld [vmem:[#allocation7 + $0xf0] sm:$0xff] }
  0x54   :  { %2263 = vmatprep.subr.bf16.mxu0 %v2578_v0  ;;  %v146_v13 = vadd.f32 %v130_v63, %v93_v58  ;;  %v147_v14 = vadd.f32 %v131_v1, %v94_v62  ;;  %v96_v18 = vmul.f32 %v2668_v9, %v79_v60  ;;  %v132_v22 = vmul.f32 %v2672_v15, %v115_v3  ;;  %v122_v57 = vld [vmem:[#allocation7 + $0xf8] sm:$0xff]  ;;  %v176_v58 = vld [vmem:[#allocation7 + $0x170] sm:$0xff] }
  0x55   :  { %v2267_v21 = vpack.c.bf16 %v200_v7, %v199_v6  ;;  %v133_v23 = vmul.f32 %v2672_v15, %v116_v4  ;;  %v187_v24 = vmul.f32 %v2674_v16, %v170_v5  ;;  %v188_v30 = vmul.f32 %v2674_v16, %v171_v11  ;;  %v177_v63 = vld [vmem:[#allocation7 + $0x178] sm:$0xff]  ;;  %v293_v6 = vld [vmem:[#allocation7 + $0x180] sm:$0xff]  ;;  %v294_v7 = vld [vmem:[#allocation7 + $0x188] sm:$0xff] }
  0x56   :  { %v201_v28 = vadd.f32 %v185_v8, %v146_v13  ;;  %v202_v29 = vadd.f32 %v186_v10, %v147_v14  ;;  %v97_v31 = vmul.f32 %v2668_v9, %v80_v12  ;;  %v148_v33 = vadd.f32 %v132_v22, %v95_v17  ;;  %v329_v13 = vld [vmem:[#allocation7 + $0x200] sm:$0xff]  ;;  %v330_v14 = vld [vmem:[#allocation7 + $0x208] sm:$0xff] }
  0x57   :  { %2265 = vmatpush3.bf16.msra.mxu0 %v2264_v61  ;;  %v149_v34 = vadd.f32 %v133_v23, %v96_v18  ;;  %v98_v35 = vmul.f32 %v2668_v9, %v81_v19  ;;  %v134_v36 = vmul.f32 %v2672_v15, %v117_v20  ;;  %v135_v41 = vmul.f32 %v2672_v15, %v118_v25  ;;  %v382_v17 = vld [vmem:[#allocation7 + $0x280] sm:$0xff]  ;;  %v383_v22 = vld [vmem:[#allocation7 + $0x288] sm:$0xff]  ;;  %v295_v23 = vld [vmem:[#allocation7 + $0x190] sm:$0xff] }
  0x58   :  { %2266 = vmatprep.subr.bf16.mxu0 %v2578_v0  ;;  %v2270_v40 = vpack.c.bf16 %v202_v29, %v201_v28  ;;  %v189_v42 = vmul.f32 %v2674_v16, %v172_v26  ;;  %v190_v43 = vmul.f32 %v2674_v16, %v173_v27  ;;  %v2712_v46 = vadd.f32 %v187_v24, %v148_v33  ;;  %v296_v28 = vld [vmem:[#allocation7 + $0x198] sm:$0xff]  ;;  %v331_v29 = vld [vmem:[#allocation7 + $0x210] sm:$0xff] }
  0x59   :  { %v2714_v47 = vadd.f32 %v188_v30, %v149_v34  ;;  %v150_v48 = vadd.f32 %v134_v36, %v97_v31  ;;  %v99_v49 = vmul.f32 %v2668_v9, %v82_v32  ;;  %v151_v52 = vadd.f32 %v135_v41, %v98_v35  ;;  %v332_v34 = vld [vmem:[#allocation7 + $0x218] sm:$0xff]  ;;  %v384_v35 = vld [vmem:[#allocation7 + $0x290] sm:$0xff]  ;;  %v297_v41 = vld [vmem:[#allocation7 + $0x1a0] sm:$0xff] }
  0x5a   :  { %v100_v53 = vmul.f32 %v2668_v9, %v83_v37  ;;  %v136_v54 = vmul.f32 %v2672_v15, %v119_v38  ;;  %v137_v55 = vmul.f32 %v2672_v15, %v120_v39  ;;  %v191_v61 = vmul.f32 %v2674_v16, %v174_v44  ;;  %v385_v36 = vld [vmem:[#allocation7 + $0x298] sm:$0xff] }
  0x5b   :  { %2268 = vmatpush3.bf16.msra.mxu0 %v2267_v21  ;;  %v2273_v59 = vpack.c.bf16 %v2714_v47, %v2712_v46  ;;  %v2722_v60 = vadd.f32 %v189_v42, %v150_v48  ;;  %v192_v62 = vmul.f32 %v2674_v16, %v175_v45  ;;  %v2727_v1 = vadd.f32 %v190_v43, %v151_v52  ;;  %v298_v46 = vld [vmem:[#allocation7 + $0x1a8] sm:$0xff]  ;;  %v333_v47 = vld [vmem:[#allocation7 + $0x220] sm:$0xff] }
  0x5c   :  { %2269 = vmatprep.subr.bf16.mxu0 %v2578_v0  ;;  %v152_v3 = vadd.f32 %v136_v54, %v99_v49  ;;  %v153_v4 = vadd.f32 %v137_v55, %v100_v53  ;;  %v101_v5 = vmul.f32 %v2668_v9, %v84_v50  ;;  %v102_v8 = vmul.f32 %v2668_v9, %v85_v51  ;;  %v334_v48 = vld [vmem:[#allocation7 + $0x228] sm:$0xff]  ;;  %v386_v53 = vld [vmem:[#allocation7 + $0x2a0] sm:$0xff] }
  0x5d   :  { %v138_v10 = vmul.f32 %v2672_v15, %v121_v56  ;;  %v139_v11 = vmul.f32 %v2672_v15, %v122_v57  ;;  %v193_v12 = vmul.f32 %v2674_v16, %v176_v58  ;;  %v2276_v18 = vpack.c.bf16 %v2727_v1, %v2722_v60  ;;  %v387_v54 = vld [vmem:[#allocation7 + $0x2a8] sm:$0xff]  ;;  %v299_v60 = vld [vmem:[#allocation7 + $0x1b0] sm:$0xff]  ;;  %v300_v1 = vld [vmem:[#allocation7 + $0x1b8] sm:$0xff] }
  0x5e   :  { %v2736_v19 = vadd.f32 %v191_v61, %v152_v3  ;;  %v2738_v20 = vadd.f32 %v192_v62, %v153_v4  ;;  %v194_v21 = vmul.f32 %v2674_v16, %v177_v63  ;;  %v309_v26 = vmul.f32 %v293_v6, %v2668_v9  ;;  %v335_v3 = vld [vmem:[#allocation7 + $0x230] sm:$0xff]  ;;  %v336_v4 = vld [vmem:[#allocation7 + $0x238] sm:$0xff] }
  0x5f   :  { %2271 = vmatpush3.bf16.msra.mxu0 %v2270_v40  ;;  %v154_v24 = vadd.f32 %v138_v10, %v101_v5  ;;  %v155_v25 = vadd.f32 %v139_v11, %v102_v8  ;;  %v310_v27 = vmul.f32 %v294_v7, %v2668_v9  ;;  %v345_v31 = vmul.f32 %v329_v13, %v2672_v15  ;;  %v388_v10 = vld [vmem:[#allocation7 + $0x2b0] sm:$0xff] }
  0x60   :  { %2272 = vmatprep.subr.bf16.mxu0 %v2578_v0  ;;  %v2279_v30 = vpack.c.bf16 %v2738_v20, %v2736_v19  ;;  %v346_v32 = vmul.f32 %v330_v14, %v2672_v15  ;;  %v398_v33 = vmul.f32 %v382_v17, %v2674_v16  ;;  %v399_v39 = vmul.f32 %v383_v22, %v2674_v16  ;;  %v389_v17 = vld [vmem:[#allocation7 + $0x2b8] sm:$0xff] }
  0x61   :  { %v2749_v37 = vadd.f32 %v193_v12, %v154_v24  ;;  %v2751_v38 = vadd.f32 %v194_v21, %v155_v25  ;;  %v311_v40 = vmul.f32 %v295_v23, %v2668_v9  ;;  %v361_v42 = vadd.f32 %v345_v31, %v309_v26  ;;  %v301_v21 = vld [vmem:[#allocation7 + $0x1c0] sm:$0xff]  ;;  %v302_v25 = vld [vmem:[#allocation7 + $0x1c8] sm:$0xff]  ;;  %v393_v19 = vld [vmem:[#allocation7 + $0x2d8] sm:$0xff] }
  0x62   :  { %v362_v43 = vadd.f32 %v346_v32, %v310_v27  ;;  %v312_v44 = vmul.f32 %v296_v28, %v2668_v9  ;;  %v347_v45 = vmul.f32 %v331_v29, %v2672_v15  ;;  %v348_v50 = vmul.f32 %v332_v34, %v2672_v15  ;;  %v337_v26 = vld [vmem:[#allocation7 + $0x240] sm:$0xff]  ;;  %v338_v27 = vld [vmem:[#allocation7 + $0x248] sm:$0xff] }
  0x63   :  { %2274 = vmatpush3.bf16.msra.mxu0 %v2273_v59  ;;  %v2282_v49 = vpack.c.bf16 %v2751_v38, %v2749_v37  ;;  %v400_v51 = vmul.f32 %v384_v35, %v2674_v16  ;;  %v401_v52 = vmul.f32 %v385_v36, %v2674_v16  ;;  %v414_v55 = vadd.f32 %v398_v33, %v361_v42  ;;  %v390_v32 = vld [vmem:[#allocation7 + $0x2c0] sm:$0xff] }
  0x64   :  { %2275 = vmatprep.subr.bf16.mxu0 %v2578_v0  ;;  %v415_v56 = vadd.f32 %v399_v39, %v362_v43  ;;  %v363_v57 = vadd.f32 %v347_v45, %v311_v40  ;;  %v313_v58 = vmul.f32 %v297_v41, %v2668_v9  ;;  %v364_v59 = vadd.f32 %v348_v50, %v312_v44  ;;  %v391_v39 = vld [vmem:[#allocation7 + $0x2c8] sm:$0xff]  ;;  %v303_v40 = vld [vmem:[#allocation7 + $0x1d0] sm:$0xff]  ;;  %v304_v45 = vld [vmem:[#allocation7 + $0x1d8] sm:$0xff] }
  0x65   :  { %v314_v61 = vmul.f32 %v298_v46, %v2668_v9  ;;  %v349_v62 = vmul.f32 %v333_v47, %v2672_v15  ;;  %v350_v63 = vmul.f32 %v334_v48, %v2672_v15  ;;  %v402_v7 = vmul.f32 %v386_v53, %v2674_v16  ;;  %v339_v46 = vld [vmem:[#allocation7 + $0x250] sm:$0xff]  ;;  %v340_v47 = vld [vmem:[#allocation7 + $0x258] sm:$0xff] }
  0x66   :  { %v2285_v5 = vpack.c.bf16 %v415_v56, %v414_v55  ;;  %v416_v6 = vadd.f32 %v400_v51, %v363_v57  ;;  %v403_v8 = vmul.f32 %v387_v54, %v2674_v16  ;;  %v417_v11 = vadd.f32 %v401_v52, %v364_v59  ;;  %v392_v52 = vld [vmem:[#allocation7 + $0x2d0] sm:$0xff]  ;;  %v305_v55 = vld [vmem:[#allocation7 + $0x1e0] sm:$0xff]  ;;  %v306_v56 = vld [vmem:[#allocation7 + $0x1e8] sm:$0xff] }
  0x67   :  { %2277 = vmatpush3.bf16.msra.mxu0 %v2276_v18  ;;  %v365_v12 = vadd.f32 %v349_v62, %v313_v58  ;;  %v366_v13 = vadd.f32 %v350_v63, %v314_v61  ;;  %v315_v14 = vmul.f32 %v299_v60, %v2668_v9  ;;  %v316_v22 = vmul.f32 %v300_v1, %v2668_v9  ;;  %v341_v61 = vld [vmem:[#allocation7 + $0x260] sm:$0xff]  ;;  %v342_v62 = vld [vmem:[#allocation7 + $0x268] sm:$0xff]  ;;  %v68_v63 = vld [vmem:[#allocation6] sm:$0xff] }
  0x68   :  { %2278 = vmatprep.subr.bf16.mxu0 %v2578_v0  ;;  %2286 = vmatpush3.bf16.msra.mxu1 %v2285_v5  ;;  %v351_v23 = vmul.f32 %v335_v3, %v2672_v15  ;;  %v352_v24 = vmul.f32 %v336_v4, %v2672_v15  ;;  %v2288_v18 = vpack.c.bf16 %v417_v11, %v416_v6  ;;  %v394_v11 = vld [vmem:[#allocation7 + $0x2e0] sm:$0xff] }
  0x69   :  { %2287 = vmatprep.subr.bf16.mxu1 %v2578_v0  ;;  %v418_v28 = vadd.f32 %v402_v7, %v365_v12  ;;  %v419_v29 = vadd.f32 %v403_v8, %v366_v13  ;;  %v404_v31 = vmul.f32 %v388_v10, %v2674_v16  ;;  %v405_v35 = vmul.f32 %v389_v17, %v2674_v16 }
  0x6a   :  { %v367_v33 = vadd.f32 %v351_v23, %v315_v14  ;;  %v368_v34 = vadd.f32 %v352_v24, %v316_v22  ;;  %v317_v36 = vmul.f32 %v301_v21, %v2668_v9  ;;  %v318_v42 = vmul.f32 %v302_v25, %v2668_v9 }
  0x6b   :  { %2280 = vmatpush3.bf16.msra.mxu0 %v2279_v30  ;;  %v2291_v41 = vpack.c.bf16 %v419_v29, %v418_v28  ;;  %v353_v43 = vmul.f32 %v337_v26, %v2672_v15  ;;  %v354_v44 = vmul.f32 %v338_v27, %v2672_v15  ;;  %v406_v51 = vmul.f32 %v390_v32, %v2674_v16  ;;  %v308_v28 = vld [vmem:[#allocation7 + $0x1f8] sm:$0xff]  ;;  %v343_v29 = vld [vmem:[#allocation7 + $0x270] sm:$0xff] }
  0x6c   :  { %2281 = vmatprep.subr.bf16.mxu0 %v2578_v0  ;;  %2289 = vmatpush3.bf16.msra.mxu1 %v2288_v18  ;;  %v420_v48 = vadd.f32 %v404_v31, %v367_v33  ;;  %v421_v50 = vadd.f32 %v405_v35, %v368_v34  ;;  %v407_v53 = vmul.f32 %v391_v39, %v2674_v16  ;;  %v307_v18 = vld [vmem:[#allocation7 + $0x1f0] sm:$0xff]  ;;  %v344_v33 = vld [vmem:[#allocation7 + $0x278] sm:$0xff] }
  0x6d   :  { %2290 = vmatprep.subr.bf16.mxu1 %v2578_v0  ;;  %v369_v20 = vadd.f32 %v353_v43, %v317_v36  ;;  %v370_v30 = vadd.f32 %v354_v44, %v318_v42  ;;  %v319_v54 = vmul.f32 %v303_v40, %v2668_v9  ;;  %v320_v58 = vmul.f32 %v304_v45, %v2668_v9  ;;  %v396_v36 = vld [vmem:[#allocation7 + $0x2f0] sm:$0xff]  ;;  %v397_v39 = vld [vmem:[#allocation7 + $0x2f8] sm:$0xff] }
  0x6e   :  { %v2294_v57 = vpack.c.bf16 %v421_v50, %v420_v48  ;;  %v355_v60 = vmul.f32 %v339_v46, %v2672_v15  ;;  %v356_v59 = vmul.f32 %v340_v47, %v2672_v15  ;;  %v408_v4 = vmul.f32 %v392_v52, %v2674_v16  ;;  %v512_v47 = vld [vmem:[#allocation7 + $0x300] sm:$0xff]  ;;  %v513_v48 = vld [vmem:[#allocation7 + $0x308] sm:$0xff] }
  0x6f   :  { %2283 = vmatpush3.bf16.msra.mxu0 %v2282_v49  ;;  %v422_v1 = vadd.f32 %v406_v51, %v369_v20  ;;  %v423_v3 = vadd.f32 %v407_v53, %v370_v30  ;;  %v409_v5 = vmul.f32 %v393_v19, %v2674_v16  ;;  %v321_v8 = vmul.f32 %v305_v55, %v2668_v9  ;;  %v395_v49 = vld [vmem:[#allocation7 + $0x2e8] sm:$0xff]  ;;  %v548_v50 = vld [vmem:[#allocation7 + $0x380] sm:$0xff] }
  0x70   :  { %2292 = vmatpush3.bf16.msra.mxu1 %v2291_v41  ;;  %v371_v6 = vadd.f32 %v355_v60, %v319_v54  ;;  %v372_v7 = vadd.f32 %v356_v59, %v320_v58  ;;  %v322_v10 = vmul.f32 %v306_v56, %v2668_v9  ;;  %v357_v37 = vmul.f32 %v341_v61, %v2672_v15  ;;  %v549_v19 = vld [vmem:[#allocation7 + $0x388] sm:$0xff]  ;;  %v601_v30 = vld [vmem:[#allocation7 + $0x400] sm:$0xff]  ;;  %v515_v58 = vld [vmem:[#allocation7 + $0x318] sm:$0xff] }
  0x71   :  { %2293 = vmatprep.subr.bf16.mxu1 %v2578_v0  ;;  %v358_v38 = vmul.f32 %v342_v62, %v2672_v15  ;;  %v2297_v12 = vpack.c.bf16 %v423_v3, %v422_v1  ;;  %v410_v17 = vmul.f32 %v394_v11, %v2674_v16  ;;  %2308 = vmatprep.subr.bf16.mxu0 %v2578_v0  ;;  %v602_v53 = vld [vmem:[#allocation7 + $0x408] sm:$0xff]  ;;  %v550_v60 = vld [vmem:[#allocation7 + $0x390] sm:$0xff] }
  0x72   :  { %2013 = vmatmul.mubr.f32.vlgmr.msra.gmra.mrb[0].mxu0 %v68_v63  ;;  %v424_v13 = vadd.f32 %v408_v4, %v371_v6  ;;  %v425_v14 = vadd.f32 %v409_v5, %v372_v7  ;;  %v373_v21 = vadd.f32 %v357_v37, %v321_v8  ;;  %v411_v23 = vmul.f32 %v395_v49, %v2674_v16  ;;  %v551_v63 = vld [vmem:[#allocation7 + $0x398] sm:$0xff]  ;;  %v603_v3 = vld [vmem:[#allocation7 + $0x410] sm:$0xff]  ;;  %v517_v11 = vld [vmem:[#allocation7 + $0x328] sm:$0xff] }
  0x73   :  { %v374_v22 = vadd.f32 %v358_v38, %v322_v10  ;;  %2082 = vmatprep.mubr.msk.f32.mxu0 %vm2579_vm0, %v2580_v2  ;;  %v323_v31 = vmul.f32 %v307_v18, %v2668_v9  ;;  %v324_v32 = vmul.f32 %v308_v28, %v2668_v9  ;;  %v359_v34 = vmul.f32 %v343_v29, %v2672_v15  ;;  %v604_v4 = vld [vmem:[#allocation7 + $0x418] sm:$0xff]  ;;  %v516_v10 = vld [vmem:[#allocation7 + $0x320] sm:$0xff]  ;;  %v554_v18 = vld [vmem:[#allocation7 + $0x3b0] sm:$0xff] }
  0x74   :  { %2295 = vmatpush3.bf16.msra.mxu1 %v2294_v57  ;;  %v2300_v24 = vpack.c.bf16 %v425_v14, %v424_v13  ;;  %v426_v25 = vadd.f32 %v410_v17, %v373_v21  ;;  %v360_v35 = vmul.f32 %v344_v33, %v2672_v15  ;;  %v412_v41 = vmul.f32 %v396_v36, %v2674_v16  ;;  %v514_v57 = vld [vmem:[#allocation7 + $0x310] sm:$0xff]  ;;  %v552_v37 = vld [vmem:[#allocation7 + $0x3a0] sm:$0xff]  ;;  %v553_v14 = vld [vmem:[#allocation7 + $0x3a8] sm:$0xff] }
  0x75   :  { %2296 = vmatprep.subr.bf16.mxu1 %v2578_v0  ;;  %v427_v26 = vadd.f32 %v411_v23, %v374_v22  ;;  %v375_v40 = vadd.f32 %v359_v34, %v323_v31  ;;  %v413_v42 = vmul.f32 %v397_v39, %v2674_v16  ;;  %v528_v51 = vmul.f32 %v512_v47, %v2668_v9  ;;  %v605_v17 = vld [vmem:[#allocation7 + $0x420] sm:$0xff]  ;;  %v606_v21 = vld [vmem:[#allocation7 + $0x428] sm:$0xff]  ;;  %v555_v33 = vld [vmem:[#allocation7 + $0x3b8] sm:$0xff] }
  0x76   :  { %v376_v43 = vadd.f32 %v360_v35, %v324_v32  ;;  %v529_v52 = vmul.f32 %v513_v48, %v2668_v9  ;;  %v564_v20 = vmul.f32 %v548_v50, %v2672_v15  ;;  %v565_v54 = vmul.f32 %v549_v19, %v2672_v15  ;;  %v607_v34 = vld [vmem:[#allocation7 + $0x430] sm:$0xff]  ;;  %v608_v35 = vld [vmem:[#allocation7 + $0x438] sm:$0xff]  ;;  %v556_v48 = vld [vmem:[#allocation7 + $0x3c0] sm:$0xff] }
  0x77   :  { %v2303_v27 = vpack.c.bf16 %v427_v26, %v426_v25  ;;  %v428_v44 = vadd.f32 %v412_v41, %v375_v40  ;;  %v617_v55 = vmul.f32 %v601_v30, %v2674_v16  ;;  %v618_v56 = vmul.f32 %v602_v53, %v2674_v16  ;;  %v518_v26 = vld [vmem:[#allocation7 + $0x330] sm:$0xff]  ;;  %v557_v50 = vld [vmem:[#allocation7 + $0x3c8] sm:$0xff] }
  0x78   :  { %2298 = vmatpush3.bf16.msra.mxu1 %v2297_v12  ;;  %v429_v45 = vadd.f32 %v413_v42, %v376_v43  ;;  %v580_v59 = vadd.f32 %v564_v20, %v528_v51  ;;  %v530_v61 = vmul.f32 %v514_v57, %v2668_v9  ;;  %v531_v62 = vmul.f32 %v515_v58, %v2668_v9  ;;  %v520_v42 = vld [vmem:[#allocation7 + $0x340] sm:$0xff]  ;;  %v521_v43 = vld [vmem:[#allocation7 + $0x348] sm:$0xff] }
  0x79   :  { %2299 = vmatprep.subr.bf16.mxu1 %v2578_v0  ;;  %v566_v1 = vmul.f32 %v550_v60, %v2672_v15  ;;  %v581_v5 = vadd.f32 %v565_v54, %v529_v52  ;;  %v567_v6 = vmul.f32 %v551_v63, %v2672_v15  ;;  %v619_v7 = vmul.f32 %v603_v3, %v2674_v16  ;;  %v609_v51 = vld [vmem:[#allocation7 + $0x440] sm:$0xff]  ;;  %v610_v53 = vld [vmem:[#allocation7 + $0x448] sm:$0xff]  ;;  %v522_v54 = vld [vmem:[#allocation7 + $0x350] sm:$0xff] }
  0x7a   :  { %v2306_v46 = vpack.c.bf16 %v429_v45, %v428_v44  ;;  %v620_v8 = vmul.f32 %v604_v4, %v2674_v16  ;;  %v633_v38 = vadd.f32 %v617_v55, %v580_v59  ;;  %v532_v12 = vmul.f32 %v516_v10, %v2668_v9  ;;  %v523_v60 = vld [vmem:[#allocation7 + $0x358] sm:$0xff]  ;;  %v558_v59 = vld [vmem:[#allocation7 + $0x3d0] sm:$0xff] }
  0x7b   :  { %v582_v49 = vadd.f32 %v566_v1, %v530_v61  ;;  %v533_v13 = vmul.f32 %v517_v11, %v2668_v9  ;;  %v634_v22 = vadd.f32 %v618_v56, %v581_v5  ;;  %v583_v23 = vadd.f32 %v567_v6, %v531_v62  ;;  %v559_v3 = vld [vmem:[#allocation7 + $0x3d8] sm:$0xff] }
  0x7c   :  { %2301 = vmatpush3.bf16.msra.mxu1 %v2300_v24  ;;  %v568_v24 = vmul.f32 %v552_v37, %v2672_v15  ;;  %v569_v25 = vmul.f32 %v553_v14, %v2672_v15  ;;  %v621_v29 = vmul.f32 %v605_v17, %v2674_v16  ;;  %v622_v31 = vmul.f32 %v606_v21, %v2674_v16  ;;  %v612_v10 = vld [vmem:[#allocation7 + $0x458] sm:$0xff]  ;;  %v525_v14 = vld [vmem:[#allocation7 + $0x368] sm:$0xff]  ;;  %v560_v17 = vld [vmem:[#allocation7 + $0x3e0] sm:$0xff] }
  0x7d   :  { %2302 = vmatprep.subr.bf16.mxu1 %v2578_v0  ;;  %v635_v28 = vadd.f32 %v619_v7, %v582_v49  ;;  %v534_v32 = vmul.f32 %v518_v26, %v2668_v9  ;;  %v2309_v36 = vpack.c.bf16 %v634_v22, %v633_v38  ;;  %v636_v39 = vadd.f32 %v620_v8, %v583_v23  ;;  %v611_v8 = vld [vmem:[#allocation7 + $0x450] sm:$0xff]  ;;  %v561_v21 = vld [vmem:[#allocation7 + $0x3e8] sm:$0xff] }
  0x7e   :  { %v584_v40 = vadd.f32 %v568_v24, %v532_v12  ;;  %v585_v41 = vadd.f32 %v569_v25, %v533_v13  ;;  %v570_v45 = vmul.f32 %v554_v18, %v2672_v15  ;;  %v623_v47 = vmul.f32 %v607_v34, %v2674_v16  ;;  %v524_v12 = vld [vmem:[#allocation7 + $0x360] sm:$0xff]  ;;  %v614_v34 = vld [vmem:[#allocation7 + $0x468] sm:$0xff] }
  0x7f   :  { %2310 = vmatpush3.bf16.msra.mxu0 %v2309_v36  ;;  %v2312_v52 = vpack.c.bf16 %v636_v39, %v635_v28  ;;  %v624_v30 = vmul.f32 %v608_v35, %v2674_v16  ;;  %v536_v57 = vmul.f32 %v520_v42, %v2668_v9  ;;  %v537_v58 = vmul.f32 %v521_v43, %v2668_v9 }
  0x80   :  { %2304 = vmatpush3.bf16.msra.mxu1 %v2303_v27  ;;  %v519_v27 = vld [vmem:[#allocation7 + $0x338] sm:$0xff]  ;;  %v637_v19 = vadd.f32 %v621_v29, %v584_v40  ;;  %v638_v20 = vadd.f32 %v622_v31, %v585_v41  ;;  %2311 = vmatprep.subr.bf16.mxu0 %v2578_v0  ;;  %v586_v55 = vadd.f32 %v570_v45, %v534_v32 }
  0x81   :  { %2305 = vmatprep.subr.bf16.mxu1 %v2578_v0  ;;  %v535_v44 = vmul.f32 %v519_v27, %v2668_v9  ;;  %v572_v62 = vmul.f32 %v556_v48, %v2672_v15  ;;  %v573_v63 = vmul.f32 %v557_v50, %v2672_v15  ;;  %v625_v1 = vmul.f32 %v609_v51, %v2674_v16  ;;  %v103_v48 = vld [vmem:[#allocation9] sm:$0x1]  ;;  %v157_v50 = vld [vmem:[#allocation9 + $0x1] sm:$0x1] }
  0x82   :  { %v2315_v61 = vpack.c.bf16 %v638_v20, %v637_v19  ;;  %v639_v4 = vadd.f32 %v623_v47, %v586_v55  ;;  %v626_v6 = vmul.f32 %v610_v53, %v2674_v16  ;;  %v538_v7 = vmul.f32 %v522_v54, %v2668_v9  ;;  %v212_v20 = vld [vmem:[#allocation9 + $0x2] sm:$0x1] }
  0x83   :  { %2313 = vmatpush3.bf16.msra.mxu0 %v2312_v52  ;;  %v588_v11 = vadd.f32 %v572_v62, %v536_v57  ;;  %v589_v37 = vadd.f32 %v573_v63, %v537_v58  ;;  %v539_v38 = vmul.f32 %v523_v60, %v2668_v9  ;;  %v574_v49 = vmul.f32 %v558_v59, %v2672_v15  ;;  %v526_v62 = vld [vmem:[#allocation7 + $0x370] sm:$0xff]  ;;  %v527_v63 = vld [vmem:[#allocation7 + $0x378] sm:$0xff] }
  0x84   :  { %2307 = vmatpush3.bf16.msra.mxu1 %v2306_v46  ;;  %v571_v46 = vmul.f32 %v555_v33, %v2672_v15  ;;  %2314 = vmatprep.subr.bf16.mxu0 %v2578_v0  ;;  %v575_v13 = vmul.f32 %v559_v3, %v2672_v15  ;;  %v627_v23 = vmul.f32 %v611_v8, %v2674_v16  ;;  %v613_v33 = vld [vmem:[#allocation7 + $0x460] sm:$0xff]  ;;  %v216_v19 = vlaneseq  ;;  %v615_v8 = vld [vmem:[#allocation7 + $0x470] sm:$0xff] }
  0x85   :  { %2332 = vmatprep.subr.bf16.mxu1 %v2578_v0  ;;  %v628_v24 = vmul.f32 %v612_v10, %v2674_v16  ;;  %v641_v25 = vadd.f32 %v625_v1, %v588_v11  ;;  %v642_v26 = vadd.f32 %v626_v6, %v589_v37  ;;  %v590_v27 = vadd.f32 %v574_v49, %v538_v7  ;;  %v562_v1 = vld [vmem:[#allocation7 + $0x3f0] sm:$0xff]  ;;  %v616_v10 = vld [vmem:[#allocation7 + $0x478] sm:$0xff] }
  0x86   :  { %v587_v56 = vadd.f32 %v571_v46, %v535_v44  ;;  %v540_v18 = vmul.f32 %v524_v12, %v2668_v9  ;;  %v591_v28 = vadd.f32 %v575_v13, %v539_v38  ;;  %v541_v29 = vmul.f32 %v525_v14, %v2668_v9 }
  0x87   :  { %2316 = vmatpush3.bf16.msra.mxu0 %v2315_v61  ;;  %v576_v31 = vmul.f32 %v560_v17, %v2672_v15  ;;  %v577_v32 = vmul.f32 %v561_v21, %v2672_v15  ;;  %v2321_v35 = vpack.c.bf16 %v642_v26, %v641_v25  ;;  %v643_v36 = vadd.f32 %v627_v23, %v590_v27  ;;  %v731_v17 = vld [vmem:[#allocation7 + $0x480] sm:$0xff]  ;;  %v732_v21 = vld [vmem:[#allocation7 + $0x488] sm:$0xff] }
  0x88   :  { %v640_v5 = vadd.f32 %v624_v30, %v587_v56  ;;  %2317 = vmatprep.subr.bf16.mxu0 %v2578_v0  ;;  %v629_v39 = vmul.f32 %v613_v33, %v2674_v16  ;;  %v644_v40 = vadd.f32 %v628_v24, %v591_v28  ;;  %v630_v43 = vmul.f32 %v614_v34, %v2674_v16  ;;  %v768_v25 = vld [vmem:[#allocation7 + $0x508] sm:$0xff]  ;;  %v820_v27 = vld [vmem:[#allocation7 + $0x580] sm:$0xff]  ;;  %v734_v33 = vld [vmem:[#allocation7 + $0x498] sm:$0xff] }
  0x89   :  { %v592_v41 = vadd.f32 %v576_v31, %v540_v18  ;;  %v593_v42 = vadd.f32 %v577_v32, %v541_v29  ;;  %v104_v51 = vmul.f32 %v103_v48, %v2668_v9  ;;  %v158_v52 = vmul.f32 %v157_v50, %v2672_v15  ;;  %v821_v18 = vld [vmem:[#allocation7 + $0x588] sm:$0xff]  ;;  %v733_v32 = vld [vmem:[#allocation7 + $0x490] sm:$0xff]  ;;  %v735_v48 = vld [vmem:[#allocation7 + $0x4a0] sm:$0xff] }
  0x8a   :  { %v2318_v22 = vpack.c.bf16 %v640_v5, %v639_v4  ;;  %v2324_v44 = vpack.c.bf16 %v644_v40, %v643_v36  ;;  %v213_v53 = vmul.f32 %v212_v20, %v2674_v16  ;;  %v217_v54 = vshrl.u32 %v216_v19, 7  ;;  %v563_v5 = vld [vmem:[#allocation7 + $0x3f8] sm:$0xff]  ;;  %v769_v34 = vld [vmem:[#allocation7 + $0x510] sm:$0xff]  ;;  %v736_v50 = vld [vmem:[#allocation7 + $0x4a8] sm:$0xff] }
  0x8b   :  { %v645_v45 = vadd.f32 %v629_v39, %v592_v41  ;;  %v646_v46 = vadd.f32 %v630_v43, %v593_v42  ;;  %v159_v30 = vadd.f32 %v158_v52, %v104_v51  ;;  %v542_v3 = vmul.f32 %v526_v62, %v2668_v9  ;;  %v770_v40 = vld [vmem:[#allocation7 + $0x518] sm:$0xff]  ;;  %v822_v42 = vld [vmem:[#allocation7 + $0x590] sm:$0xff]  ;;  %v771_v51 = vld [vmem:[#allocation7 + $0x520] sm:$0xff] }
  0x8c   :  { %2319 = vmatpush3.bf16.msra.mxu0 %v2318_v22  ;;  %v2870_v56 = vsub.s32 0, %v217_v54  ;;  %v543_v4 = vmul.f32 %v527_v63, %v2668_v9  ;;  %v578_v6 = vmul.f32 %v562_v1, %v2672_v15  ;;  %v579_v7 = vmul.f32 %v563_v5, %v2672_v15  ;;  %v767_v22 = vld [vmem:[#allocation7 + $0x500] sm:$0xff]  ;;  %v823_v43 = vld [vmem:[#allocation7 + $0x598] sm:$0xff]  ;;  %v773_v63 = vld [vmem:[#allocation7 + $0x530] sm:$0xff] }
  0x8d   :  { %2320 = vmatprep.subr.bf16.mxu0 %v2578_v0  ;;  %v2327_v47 = vpack.c.bf16 %v646_v46, %v645_v45  ;;  %v214_v55 = vadd.f32 %v213_v53, %v159_v30  ;;  %v631_v37 = vmul.f32 %v615_v8, %v2674_v16  ;;  %v632_v38 = vmul.f32 %v616_v10, %v2674_v16  ;;  %v772_v53 = vld [vmem:[#allocation7 + $0x528] sm:$0xff]  ;;  %v824_v54 = vld [vmem:[#allocation7 + $0x5a0] sm:$0xff]  ;;  %v738_v62 = vld [vmem:[#allocation7 + $0x4b8] sm:$0xff] }
  0x8e   :  { %v594_v11 = vadd.f32 %v578_v6, %v542_v3  ;;  %v595_v49 = vadd.f32 %v579_v7, %v543_v4  ;;  %v747_v23 = vmul.f32 %v731_v17, %v2668_v9  ;;  %v748_v24 = vmul.f32 %v732_v21, %v2668_v9  ;;  %v774_v6 = vld [vmem:[#allocation7 + $0x538] sm:$0xff]  ;;  %v826_v7 = vld [vmem:[#allocation7 + $0x5b0] sm:$0xff] }
  0x8f   :  { %v219_v57 = vrot.slane %v214_v55, %v2870_v56  ;;  %v783_v26 = vmul.f32 %v767_v22, %v2672_v15  ;;  %v784_v28 = vmul.f32 %v768_v25, %v2672_v15  ;;  %v836_v29 = vmul.f32 %v820_v27, %v2674_v16  ;;  %v825_v55 = vld [vmem:[#allocation7 + $0x5a8] sm:$0xff]  ;;  %v827_v8 = vld [vmem:[#allocation7 + $0x5b8] sm:$0xff]  ;;  %v775_v22 = vld [vmem:[#allocation7 + $0x540] sm:$0xff] }
  0x90   :  { %2322 = vmatpush3.bf16.msra.mxu0 %v2321_v35  ;;  %v647_v12 = vadd.f32 %v631_v37, %v594_v11  ;;  %v648_v13 = vadd.f32 %v632_v38, %v595_v49  ;;  %v837_v31 = vmul.f32 %v821_v18, %v2674_v16  ;;  %v749_v36 = vmul.f32 %v733_v32, %v2668_v9  ;;  %v739_v49 = vld [vmem:[#allocation7 + $0x4c0] sm:$0xff] }
  0x91   :  { %2323 = vmatprep.subr.bf16.mxu0 %v2578_v0  ;;  %v799_v35 = vadd.f32 %v783_v26, %v747_v23  ;;  %v750_v39 = vmul.f32 %v734_v33, %v2668_v9  ;;  %v785_v41 = vmul.f32 %v769_v34, %v2672_v15  ;;  %v786_v45 = vmul.f32 %v770_v40, %v2672_v15  ;;  %v776_v23 = vld [vmem:[#allocation7 + $0x548] sm:$0xff] }
  0x92   :  { %v2330_v14 = vpack.c.bf16 %v648_v13, %v647_v12  ;;  %v838_v46 = vmul.f32 %v822_v42, %v2674_v16  ;;  %v751_v20 = vmul.f32 %v735_v48, %v2668_v9  ;;  %v752_v30 = vmul.f32 %v736_v50, %v2668_v9  ;;  %v740_v12 = vld [vmem:[#allocation7 + $0x4c8] sm:$0xff]  ;;  %v830_v48 = vld [vmem:[#allocation7 + $0x5d0] sm:$0xff]  ;;  %v831_v50 = vld [vmem:[#allocation7 + $0x5d8] sm:$0xff] }
  0x93   :  { %v852_v52 = vadd.f32 %v836_v29, %v799_v35  ;;  %v801_v19 = vadd.f32 %v785_v41, %v749_v36  ;;  %v840_v3 = vmul.f32 %v824_v54, %v2674_v16  ;;  %v841_v4 = vmul.f32 %v825_v55, %v2674_v16  ;;  %v741_v29 = vld [vmem:[#allocation7 + $0x4d0] sm:$0xff]  ;;  %v742_v35 = vld [vmem:[#allocation7 + $0x4d8] sm:$0xff]  ;;  %v744_v54 = vld [vmem:[#allocation7 + $0x4e8] sm:$0xff] }
  0x94   :  { %2325 = vmatpush3.bf16.msra.mxu0 %v2324_v44  ;;  %v800_v44 = vadd.f32 %v784_v28, %v748_v24  ;;  %v754_v13 = vmul.f32 %v738_v62, %v2668_v9  ;;  %v790_v17 = vmul.f32 %v774_v6, %v2672_v15  ;;  %v842_v21 = vmul.f32 %v826_v7, %v2674_v16  ;;  %v828_v24 = vld [vmem:[#allocation7 + $0x5c0] sm:$0xff]  ;;  %v829_v28 = vld [vmem:[#allocation7 + $0x5c8] sm:$0xff]  ;;  %v777_v36 = vld [vmem:[#allocation7 + $0x550] sm:$0xff] }
  0x95   :  { %2326 = vmatprep.subr.bf16.mxu0 %v2578_v0  ;;  %v854_v1 = vadd.f32 %v838_v46, %v801_v19  ;;  %v843_v18 = vmul.f32 %v827_v8, %v2674_v16  ;;  %v755_v33 = vmul.f32 %v739_v49, %v2668_v9  ;;  %v756_v34 = vmul.f32 %v740_v12, %v2668_v9  ;;  %v779_v55 = vld [vmem:[#allocation7 + $0x560] sm:$0xff]  ;;  %v833_v8 = vld [vmem:[#allocation7 + $0x5e8] sm:$0xff] }
  0x96   :  { %v806_v32 = vadd.f32 %v790_v17, %v754_v13  ;;  %v791_v40 = vmul.f32 %v775_v22, %v2672_v15  ;;  %v792_v41 = vmul.f32 %v776_v23, %v2672_v15  ;;  %v844_v42 = vmul.f32 %v828_v24, %v2674_v16  ;;  %v832_v7 = vld [vmem:[#allocation7 + $0x5e0] sm:$0xff] }
  0x97   :  { %v845_v46 = vmul.f32 %v829_v28, %v2674_v16  ;;  %v758_v19 = vmul.f32 %v742_v35, %v2668_v9  ;;  %v849_v13 = vmul.f32 %v833_v8, %v2674_v16  ;;  %v326_v23 = vld [vmem:[#allocation9 + $0x3] sm:$0x1]  ;;  %v378_v24 = vld [vmem:[#allocation9 + $0x4] sm:$0x1] }
  0x98   :  { %2328 = vmatpush3.bf16.msra.mxu0 %v2327_v47  ;;  %v839_v47 = vmul.f32 %v823_v43, %v2674_v16  ;;  %v778_v43 = vld [vmem:[#allocation7 + $0x558] sm:$0xff] }
  0x99   :  { %2329 = vmatprep.subr.bf16.mxu0 %v2578_v0 }
  0x9c   :  { %2331 = vmatpush3.bf16.msra.mxu0 %v2330_v14  ;;  %v789_v14 = vmul.f32 %v773_v63, %v2672_v15 }
  0x9d   :  { %2356 = vmatprep.subr.bf16.mxu0 %v2578_v0 }
 0x145   :  { %v287_v58 = vpop.f32.mrb[0].mxu0 }
 0x146   :  { %v288_v60 = vadd.f32 %v287_v58, %v219_v57  ;;  %v2014_v59 = vpop.f32.mrb[1].mxu0  ;;  %v853_v57 = vadd.f32 %v837_v31, %v800_v44  ;;  %v802_v58 = vadd.f32 %v786_v45, %v750_v39  ;;  %v859_v45 = vadd.f32 %v843_v18, %v806_v32 }
 0x147   :  { %v788_v59 = vmul.f32 %v772_v53, %v2672_v15  ;;  %v794_v53 = vmul.f32 %v778_v43, %v2672_v15  ;;  %v782_v43 = vld [vmem:[#allocation7 + $0x578] sm:$0xff] }
 0x148   :  { %v291_v61 = vmax.f32 %v288_v60, 0.0  ;;  %v787_v60 = vmul.f32 %v771_v51, %v2672_v15  ;;  %v2333_v10 = vpack.c.bf16 %v853_v57, %v852_v52  ;;  %v855_v11 = vadd.f32 %v839_v47, %v802_v58  ;;  %v780_v57 = vld [vmem:[#allocation7 + $0x568] sm:$0xff] }
 0x149   :  { %v804_v38 = vadd.f32 %v788_v59, %v752_v30  ;;  %v757_v47 = vmul.f32 %v741_v29, %v2668_v9  ;;  %v807_v51 = vadd.f32 %v791_v40, %v755_v33  ;;  %v808_v52 = vadd.f32 %v792_v41, %v756_v34  ;;  %v743_v30 = vld [vmem:[#allocation7 + $0x4e0] sm:$0xff]  ;;  %v781_v40 = vld [vmem:[#allocation7 + $0x570] sm:$0xff] }
 0x14a   :  { %2048 = vmatmul.mubr.f32.vlgmr.msra.gmra.mrb[0].mxu1 %v291_v61  ;;  %v737_v61 = vld [vmem:[#allocation7 + $0x4b0] sm:$0xff]  ;;  %v803_v37 = vadd.f32 %v787_v60, %v751_v20  ;;  %v2336_v25 = vpack.c.bf16 %v855_v11, %v854_v1  ;;  %v793_v20 = vmul.f32 %v777_v36, %v2672_v15  ;;  %v846_v60 = vmul.f32 %v830_v48, %v2674_v16 }
 0x14b   :  { %2117 = vmatprep.mubr.msk.f32.mxu1 %vm2579_vm0, %v2580_v2  ;;  %v753_v5 = vmul.f32 %v737_v61, %v2668_v9  ;;  %2334 = vmatpush3.bf16.msra.mxu1 %v2333_v10  ;;  %v857_v27 = vadd.f32 %v841_v4, %v804_v38  ;;  %v847_v59 = vmul.f32 %v831_v50, %v2674_v16  ;;  %v745_v36 = vld [vmem:[#allocation7 + $0x4f0] sm:$0xff] }
 0x14c   :  { %v856_v26 = vadd.f32 %v840_v3, %v803_v37  ;;  %2335 = vmatprep.subr.bf16.mxu1 %v2578_v0  ;;  %v860_v61 = vadd.f32 %v844_v42, %v807_v51  ;;  %v861_v62 = vadd.f32 %v845_v46, %v808_v52  ;;  %v809_v63 = vadd.f32 %v793_v20, %v757_v47  ;;  %v834_v46 = vld [vmem:[#allocation7 + $0x5f0] sm:$0xff]  ;;  %v835_v47 = vld [vmem:[#allocation7 + $0x5f8] sm:$0xff] }
 0x14d   :  { %v805_v31 = vadd.f32 %v789_v14, %v753_v5  ;;  %v759_v1 = vmul.f32 %v743_v30, %v2668_v9  ;;  %v810_v3 = vadd.f32 %v794_v53, %v758_v19  ;;  %v760_v4 = vmul.f32 %v744_v54, %v2668_v9  ;;  %v950_v53 = vld [vmem:[#allocation7 + $0x600] sm:$0xff]  ;;  %v951_v54 = vld [vmem:[#allocation7 + $0x608] sm:$0xff] }
 0x14e   :  { %v2339_v39 = vpack.c.bf16 %v857_v27, %v856_v26  ;;  %v795_v5 = vmul.f32 %v779_v55, %v2672_v15  ;;  %v796_v6 = vmul.f32 %v780_v57, %v2672_v15  ;;  %v2345_v10 = vpack.c.bf16 %v861_v62, %v860_v61  ;;  %v431_v27 = vld [vmem:[#allocation9 + $0x5] sm:$0x1]  ;;  %v1040_v62 = vld [vmem:[#allocation7 + $0x708] sm:$0xff] }
 0x14f   :  { %v858_v44 = vadd.f32 %v842_v21, %v805_v31  ;;  %2337 = vmatpush3.bf16.msra.mxu1 %v2336_v25  ;;  %v862_v11 = vadd.f32 %v846_v60, %v809_v63  ;;  %v848_v37 = vmul.f32 %v832_v7, %v2674_v16  ;;  %v863_v38 = vadd.f32 %v847_v59, %v810_v3  ;;  %v986_v55 = vld [vmem:[#allocation7 + $0x680] sm:$0xff]  ;;  %v987_v60 = vld [vmem:[#allocation7 + $0x688] sm:$0xff] }
 0x150   :  { %2338 = vmatprep.subr.bf16.mxu1 %v2578_v0  ;;  %v811_v49 = vadd.f32 %v795_v5, %v759_v1  ;;  %v812_v12 = vadd.f32 %v796_v6, %v760_v4  ;;  %v327_v25 = vmul.f32 %v326_v23, %v2668_v9  ;;  %v379_v26 = vmul.f32 %v378_v24, %v2672_v15  ;;  %v1039_v61 = vld [vmem:[#allocation7 + $0x700] sm:$0xff]  ;;  %v952_v4 = vld [vmem:[#allocation7 + $0x610] sm:$0xff]  ;;  %v953_v5 = vld [vmem:[#allocation7 + $0x618] sm:$0xff] }
 0x151   :  { %v2342_v58 = vpack.c.bf16 %v859_v45, %v858_v44  ;;  %v2348_v14 = vpack.c.bf16 %v863_v38, %v862_v11  ;;  %v432_v28 = vmul.f32 %v431_v27, %v2674_v16  ;;  %v761_v41 = vmul.f32 %v745_v36, %v2668_v9  ;;  %v988_v6 = vld [vmem:[#allocation7 + $0x690] sm:$0xff]  ;;  %v989_v11 = vld [vmem:[#allocation7 + $0x698] sm:$0xff]  ;;  %v990_v23 = vld [vmem:[#allocation7 + $0x6a0] sm:$0xff] }
 0x152   :  { %v864_v17 = vadd.f32 %v848_v37, %v811_v49  ;;  %v865_v21 = vadd.f32 %v849_v13, %v812_v12  ;;  %v380_v18 = vadd.f32 %v379_v26, %v327_v25  ;;  %v797_v44 = vmul.f32 %v781_v40, %v2672_v15  ;;  %v1041_v38 = vld [vmem:[#allocation7 + $0x710] sm:$0xff]  ;;  %v1042_v49 = vld [vmem:[#allocation7 + $0x718] sm:$0xff] }
 0x153   :  { %2340 = vmatpush3.bf16.msra.mxu1 %v2339_v39  ;;  %v746_v39 = vld [vmem:[#allocation7 + $0x4f8] sm:$0xff]  ;;  %v798_v45 = vmul.f32 %v782_v43, %v2672_v15  ;;  %v850_v50 = vmul.f32 %v834_v46, %v2674_v16  ;;  %v851_v51 = vmul.f32 %v835_v47, %v2674_v16  ;;  %v966_v57 = vmul.f32 %v950_v53, %v2668_v9 }
 0x154   :  { %2341 = vmatprep.subr.bf16.mxu1 %v2578_v0  ;;  %v2351_v22 = vpack.c.bf16 %v865_v21, %v864_v17  ;;  %v433_v29 = vadd.f32 %v432_v28, %v380_v18  ;;  %v762_v42 = vmul.f32 %v746_v39, %v2668_v9  ;;  %v813_v48 = vadd.f32 %v797_v44, %v761_v41  ;;  %v954_v21 = vld [vmem:[#allocation7 + $0x620] sm:$0xff]  ;;  %v991_v18 = vld [vmem:[#allocation7 + $0x6a8] sm:$0xff]  ;;  %v957_v36 = vld [vmem:[#allocation7 + $0x638] sm:$0xff] }
 0x155   :  { %v1002_v59 = vmul.f32 %v986_v55, %v2672_v15  ;;  %v1003_v63 = vmul.f32 %v987_v60, %v2672_v15  ;;  %v1055_v1 = vmul.f32 %v1039_v61, %v2674_v16  ;;  %v1056_v3 = vmul.f32 %v1040_v62, %v2674_v16  ;;  %v1043_v28 = vld [vmem:[#allocation7 + $0x720] sm:$0xff]  ;;  %v992_v39 = vld [vmem:[#allocation7 + $0x6b0] sm:$0xff]  ;;  %v993_v44 = vld [vmem:[#allocation7 + $0x6b8] sm:$0xff] }
 0x156   :  { %v438_v31 = vrot.slane %v433_v29, %v2870_v56  ;;  %v814_v52 = vadd.f32 %v798_v45, %v762_v42  ;;  %v866_v19 = vadd.f32 %v850_v50, %v813_v48  ;;  %v968_v8 = vmul.f32 %v952_v4, %v2668_v9  ;;  %v1044_v29 = vld [vmem:[#allocation7 + $0x728] sm:$0xff]  ;;  %v1045_v45 = vld [vmem:[#allocation7 + $0x730] sm:$0xff]  ;;  %v1046_v46 = vld [vmem:[#allocation7 + $0x738] sm:$0xff] }
 0x157   :  { %2343 = vmatpush3.bf16.msra.mxu1 %v2342_v58  ;;  %v967_v58 = vmul.f32 %v951_v54, %v2668_v9  ;;  %v1018_v7 = vadd.f32 %v1002_v59, %v966_v57  ;;  %v1004_v37 = vmul.f32 %v988_v6, %v2672_v15  ;;  %v1005_v13 = vmul.f32 %v989_v11, %v2672_v15  ;;  %v994_v55 = vld [vmem:[#allocation7 + $0x6c0] sm:$0xff]  ;;  %v995_v57 = vld [vmem:[#allocation7 + $0x6c8] sm:$0xff] }
 0x158   :  { %2344 = vmatprep.subr.bf16.mxu1 %v2578_v0  ;;  %v867_v20 = vadd.f32 %v851_v51, %v814_v52  ;;  %v1058_v17 = vmul.f32 %v1042_v49, %v2674_v16  ;;  %v970_v26 = vmul.f32 %v954_v21, %v2668_v9  ;;  %v1059_v41 = vmul.f32 %v1043_v28, %v2674_v16  ;;  %v958_v52 = vld [vmem:[#allocation7 + $0x640] sm:$0xff]  ;;  %v997_v49 = vld [vmem:[#allocation7 + $0x6d8] sm:$0xff]  ;;  %v1049_v21 = vld [vmem:[#allocation7 + $0x750] sm:$0xff] }
 0x159   :  { %v1019_v12 = vadd.f32 %v1003_v63, %v967_v58  ;;  %v1071_v24 = vadd.f32 %v1055_v1, %v1018_v7  ;;  %v1020_v25 = vadd.f32 %v1004_v37, %v968_v8  ;;  %v1060_v42 = vmul.f32 %v1044_v29, %v2674_v16  ;;  %v1047_v58 = vld [vmem:[#allocation7 + $0x740] sm:$0xff]  ;;  %v1048_v63 = vld [vmem:[#allocation7 + $0x748] sm:$0xff]  ;;  %v960_v1 = vld [vmem:[#allocation7 + $0x650] sm:$0xff] }
 0x15a   :  { %v2354_v30 = vpack.c.bf16 %v867_v20, %v866_v19  ;;  %v959_v19 = vld [vmem:[#allocation7 + $0x648] sm:$0xff]  ;;  %v973_v20 = vmul.f32 %v957_v36, %v2668_v9  ;;  %v1009_v53 = vmul.f32 %v993_v44, %v2672_v15  ;;  %v1061_v54 = vmul.f32 %v1045_v45, %v2674_v16  ;;  %v961_v7 = vld [vmem:[#allocation7 + $0x658] sm:$0xff]  ;;  %v996_v8 = vld [vmem:[#allocation7 + $0x6d0] sm:$0xff] }
 0x15b   :  { %2346 = vmatpush3.bf16.msra.mxu1 %v2345_v10  ;;  %v969_v10 = vmul.f32 %v953_v5, %v2668_v9  ;;  %v1062_v62 = vmul.f32 %v1046_v46, %v2674_v16  ;;  %v974_v5 = vmul.f32 %v958_v52, %v2668_v9  ;;  %v975_v6 = vmul.f32 %v959_v19, %v2668_v9  ;;  %v963_v28 = vld [vmem:[#allocation7 + $0x668] sm:$0xff]  ;;  %v998_v29 = vld [vmem:[#allocation7 + $0x6e0] sm:$0xff] }
 0x15c   :  { %2347 = vmatprep.subr.bf16.mxu1 %v2578_v0  ;;  %v1025_v4 = vadd.f32 %v1009_v53, %v973_v20  ;;  %v1010_v11 = vmul.f32 %v994_v55, %v2672_v15  ;;  %v1011_v37 = vmul.f32 %v995_v57, %v2672_v15  ;;  %v1051_v45 = vld [vmem:[#allocation7 + $0x760] sm:$0xff]  ;;  %v1052_v46 = vld [vmem:[#allocation7 + $0x768] sm:$0xff] }
 0x15d   :  { %v1068_v20 = vmul.f32 %v1052_v46, %v2674_v16  ;;  %v545_v57 = vld [vmem:[#allocation9 + $0x6] sm:$0x1] }
 0x15f   :  { %2349 = vmatpush3.bf16.msra.mxu1 %v2348_v14  ;;  %v1057_v14 = vmul.f32 %v1041_v38, %v2674_v16  ;;  %v1063_v38 = vmul.f32 %v1047_v58, %v2674_v16  ;;  %v597_v58 = vld [vmem:[#allocation9 + $0x7] sm:$0x1] }
 0x160   :  { %2350 = vmatprep.subr.bf16.mxu1 %v2578_v0 }
 0x161   :  { %v1073_v40 = vadd.f32 %v1057_v14, %v1020_v25  ;;  %v1064_v14 = vmul.f32 %v1048_v63, %v2674_v16  ;;  %v977_v25 = vmul.f32 %v961_v7, %v2668_v9 }
 0x163   :  { %2352 = vmatpush3.bf16.msra.mxu1 %v2351_v22  ;;  %v955_v22 = vld [vmem:[#allocation7 + $0x628] sm:$0xff] }
 0x164   :  { %2353 = vmatprep.subr.bf16.mxu1 %v2578_v0  ;;  %v971_v27 = vmul.f32 %v955_v22, %v2668_v9  ;;  %v1050_v22 = vld [vmem:[#allocation7 + $0x758] sm:$0xff] }
 0x167   :  { %2355 = vmatpush3.bf16.msra.mxu1 %v2354_v30  ;;  %v1008_v30 = vmul.f32 %v992_v39, %v2672_v15 }
 0x168   :  { %2380 = vmatprep.subr.bf16.mxu1 %v2578_v0 }
 0x21d   :  { %v506_v32 = vpop.f32.mrb[0].mxu1 }
 0x21e   :  { %v507_v33 = vadd.f32 %v506_v32, %v438_v31  ;;  %v2049_v34 = vpop.f32.mrb[1].mxu1  ;;  %v1072_v31 = vadd.f32 %v1056_v3, %v1019_v12  ;;  %v1021_v32 = vadd.f32 %v1005_v13, %v969_v10  ;;  %v1078_v13 = vadd.f32 %v1062_v62, %v1025_v4 }
 0x21f   :  { %v1007_v34 = vmul.f32 %v991_v18, %v2672_v15  ;;  %v1013_v18 = vmul.f32 %v997_v49, %v2672_v15  ;;  %v1001_v49 = vld [vmem:[#allocation7 + $0x6f8] sm:$0xff] }
 0x220   :  { %v510_v35 = vmax.f32 %v507_v33, 0.0  ;;  %v1006_v33 = vmul.f32 %v990_v23, %v2672_v15  ;;  %v2357_v47 = vpack.c.bf16 %v1072_v31, %v1071_v24  ;;  %v1074_v48 = vadd.f32 %v1058_v17, %v1021_v32  ;;  %v999_v31 = vld [vmem:[#allocation7 + $0x6e8] sm:$0xff] }
 0x221   :  { %v1023_v51 = vadd.f32 %v1007_v34, %v971_v27  ;;  %v976_v17 = vmul.f32 %v960_v1, %v2668_v9  ;;  %v1026_v23 = vadd.f32 %v1010_v11, %v974_v5  ;;  %v1027_v24 = vadd.f32 %v1011_v37, %v975_v6  ;;  %v962_v27 = vld [vmem:[#allocation7 + $0x660] sm:$0xff]  ;;  %v1000_v11 = vld [vmem:[#allocation7 + $0x6f0] sm:$0xff] }
 0x222   :  { %2083 = vmatmul.mubr.f32.vlgmr.msra.gmra.mrb[2].mxu0 %v510_v35  ;;  %v956_v35 = vld [vmem:[#allocation7 + $0x630] sm:$0xff]  ;;  %v1022_v50 = vadd.f32 %v1006_v33, %v970_v26  ;;  %v2360_v60 = vpack.c.bf16 %v1074_v48, %v1073_v40  ;;  %v1012_v26 = vmul.f32 %v996_v8, %v2672_v15  ;;  %v1065_v33 = vmul.f32 %v1049_v21, %v2674_v16 }
 0x223   :  { %2152 = vmatprep.mubr.msk.f32.mxu0 %vm2579_vm0, %v2580_v2  ;;  %v972_v43 = vmul.f32 %v956_v35, %v2668_v9  ;;  %2358 = vmatpush3.bf16.msra.mxu0 %v2357_v47  ;;  %v1076_v61 = vadd.f32 %v1060_v42, %v1023_v51  ;;  %v1066_v34 = vmul.f32 %v1050_v22, %v2674_v16  ;;  %v964_v8 = vld [vmem:[#allocation7 + $0x670] sm:$0xff] }
 0x224   :  { %v1075_v59 = vadd.f32 %v1059_v41, %v1022_v50  ;;  %2359 = vmatprep.subr.bf16.mxu0 %v2578_v0  ;;  %v1079_v35 = vadd.f32 %v1063_v38, %v1026_v23  ;;  %v1080_v36 = vadd.f32 %v1064_v14, %v1027_v24  ;;  %v1028_v39 = vadd.f32 %v1012_v26, %v976_v17  ;;  %v1053_v14 = vld [vmem:[#allocation7 + $0x770] sm:$0xff]  ;;  %v1054_v17 = vld [vmem:[#allocation7 + $0x778] sm:$0xff] }
 0x225   :  { %v1024_v3 = vadd.f32 %v1008_v30, %v972_v43  ;;  %v978_v40 = vmul.f32 %v962_v27, %v2668_v9  ;;  %v1029_v41 = vadd.f32 %v1013_v18, %v977_v25  ;;  %v979_v42 = vmul.f32 %v963_v28, %v2668_v9  ;;  %v1169_v18 = vld [vmem:[#allocation7 + $0x780] sm:$0xff]  ;;  %v1170_v28 = vld [vmem:[#allocation7 + $0x788] sm:$0xff] }
 0x226   :  { %v2363_v10 = vpack.c.bf16 %v1076_v61, %v1075_v59  ;;  %v1014_v43 = vmul.f32 %v998_v29, %v2672_v15  ;;  %v1015_v44 = vmul.f32 %v999_v31, %v2672_v15  ;;  %v2369_v47 = vpack.c.bf16 %v1080_v36, %v1079_v35  ;;  %v650_v61 = vld [vmem:[#allocation9 + $0x8] sm:$0x1]  ;;  %v1205_v29 = vld [vmem:[#allocation7 + $0x800] sm:$0xff] }
 0x227   :  { %v1077_v12 = vadd.f32 %v1061_v54, %v1024_v3  ;;  %2361 = vmatpush3.bf16.msra.mxu0 %v2360_v60  ;;  %v1081_v48 = vadd.f32 %v1065_v33, %v1028_v39  ;;  %v1067_v50 = vmul.f32 %v1051_v45, %v2674_v16  ;;  %v1082_v51 = vadd.f32 %v1066_v34, %v1029_v41  ;;  %v1206_v33 = vld [vmem:[#allocation7 + $0x808] sm:$0xff]  ;;  %v1258_v35 = vld [vmem:[#allocation7 + $0x880] sm:$0xff] }
 0x228   :  { %2362 = vmatprep.subr.bf16.mxu0 %v2578_v0  ;;  %v1030_v52 = vadd.f32 %v1014_v43, %v978_v40  ;;  %v1031_v19 = vadd.f32 %v1015_v44, %v979_v42  ;;  %v546_v60 = vmul.f32 %v545_v57, %v2668_v9  ;;  %v598_v59 = vmul.f32 %v597_v58, %v2672_v15  ;;  %v1259_v36 = vld [vmem:[#allocation7 + $0x888] sm:$0xff]  ;;  %v1171_v42 = vld [vmem:[#allocation7 + $0x790] sm:$0xff]  ;;  %v1172_v43 = vld [vmem:[#allocation7 + $0x798] sm:$0xff] }
 0x229   :  { %v2366_v32 = vpack.c.bf16 %v1078_v13, %v1077_v12  ;;  %v2372_v30 = vpack.c.bf16 %v1082_v51, %v1081_v48  ;;  %v651_v63 = vmul.f32 %v650_v61, %v2674_v16  ;;  %v980_v37 = vmul.f32 %v964_v8, %v2668_v9  ;;  %v1207_v44 = vld [vmem:[#allocation7 + $0x810] sm:$0xff]  ;;  %v1208_v48 = vld [vmem:[#allocation7 + $0x818] sm:$0xff]  ;;  %v1209_v57 = vld [vmem:[#allocation7 + $0x820] sm:$0xff] }
 0x22a   :  { %v1083_v53 = vadd.f32 %v1067_v50, %v1030_v52  ;;  %v1084_v54 = vadd.f32 %v1068_v20, %v1031_v19  ;;  %v599_v62 = vadd.f32 %v598_v59, %v546_v60  ;;  %v1016_v12 = vmul.f32 %v1000_v11, %v2672_v15  ;;  %v1260_v51 = vld [vmem:[#allocation7 + $0x890] sm:$0xff]  ;;  %v1261_v52 = vld [vmem:[#allocation7 + $0x898] sm:$0xff] }
 0x22b   :  { %2364 = vmatpush3.bf16.msra.mxu0 %v2363_v10  ;;  %v965_v10 = vld [vmem:[#allocation7 + $0x678] sm:$0xff]  ;;  %v1017_v13 = vmul.f32 %v1001_v49, %v2672_v15  ;;  %v1069_v22 = vmul.f32 %v1053_v14, %v2674_v16  ;;  %v1070_v23 = vmul.f32 %v1054_v17, %v2674_v16  ;;  %v1185_v31 = vmul.f32 %v1169_v18, %v2668_v9 }
 0x22c   :  { %2365 = vmatprep.subr.bf16.mxu0 %v2578_v0  ;;  %v2375_v55 = vpack.c.bf16 %v1084_v54, %v1083_v53  ;;  %v652_v1 = vadd.f32 %v651_v63, %v599_v62  ;;  %v981_v38 = vmul.f32 %v965_v10, %v2668_v9  ;;  %v1032_v21 = vadd.f32 %v1016_v12, %v980_v37  ;;  %v1173_v54 = vld [vmem:[#allocation7 + $0x7a0] sm:$0xff]  ;;  %v1210_v62 = vld [vmem:[#allocation7 + $0x828] sm:$0xff]  ;;  %v1176_v8 = vld [vmem:[#allocation7 + $0x7b8] sm:$0xff] }
 0x22d   :  { %v1221_v34 = vmul.f32 %v1205_v29, %v2672_v15  ;;  %v1222_v39 = vmul.f32 %v1206_v33, %v2672_v15  ;;  %v1274_v40 = vmul.f32 %v1258_v35, %v2674_v16  ;;  %v1275_v41 = vmul.f32 %v1259_v36, %v2674_v16  ;;  %v1262_v63 = vld [vmem:[#allocation7 + $0x8a0] sm:$0xff]  ;;  %v1211_v10 = vld [vmem:[#allocation7 + $0x830] sm:$0xff]  ;;  %v1212_v12 = vld [vmem:[#allocation7 + $0x838] sm:$0xff] }
 0x22e   :  { %v657_v3 = vrot.slane %v652_v1, %v2870_v56  ;;  %v1033_v24 = vadd.f32 %v1017_v13, %v981_v38  ;;  %v1085_v25 = vadd.f32 %v1069_v22, %v1032_v21  ;;  %v1187_v46 = vmul.f32 %v1171_v42, %v2668_v9  ;;  %v1263_v1 = vld [vmem:[#allocation7 + $0x8a8] sm:$0xff]  ;;  %v1264_v13 = vld [vmem:[#allocation7 + $0x8b0] sm:$0xff]  ;;  %v1265_v14 = vld [vmem:[#allocation7 + $0x8b8] sm:$0xff] }
 0x22f   :  { %2367 = vmatpush3.bf16.msra.mxu0 %v2366_v32  ;;  %v1186_v32 = vmul.f32 %v1170_v28, %v2668_v9  ;;  %v1237_v45 = vadd.f32 %v1221_v34, %v1185_v31  ;;  %v1223_v50 = vmul.f32 %v1207_v44, %v2672_v15  ;;  %v1224_v20 = vmul.f32 %v1208_v48, %v2672_v15  ;;  %v1213_v29 = vld [vmem:[#allocation7 + $0x840] sm:$0xff]  ;;  %v1214_v31 = vld [vmem:[#allocation7 + $0x848] sm:$0xff] }
 0x230   :  { %2368 = vmatprep.subr.bf16.mxu0 %v2578_v0  ;;  %v1086_v26 = vadd.f32 %v1070_v23, %v1033_v24  ;;  %v1277_v53 = vmul.f32 %v1261_v52, %v2674_v16  ;;  %v1189_v59 = vmul.f32 %v1173_v54, %v2668_v9  ;;  %v1278_v37 = vmul.f32 %v1262_v63, %v2674_v16  ;;  %v1177_v24 = vld [vmem:[#allocation7 + $0x7c0] sm:$0xff]  ;;  %v1216_v52 = vld [vmem:[#allocation7 + $0x858] sm:$0xff]  ;;  %v1268_v54 = vld [vmem:[#allocation7 + $0x8d0] sm:$0xff] }
 0x231   :  { %v1238_v19 = vadd.f32 %v1222_v39, %v1186_v32  ;;  %v1290_v58 = vadd.f32 %v1274_v40, %v1237_v45  ;;  %v1239_v60 = vadd.f32 %v1223_v50, %v1187_v46  ;;  %v1279_v38 = vmul.f32 %v1263_v1, %v2674_v16  ;;  %v1266_v32 = vld [vmem:[#allocation7 + $0x8c0] sm:$0xff]  ;;  %v1267_v39 = vld [vmem:[#allocation7 + $0x8c8] sm:$0xff]  ;;  %v1179_v40 = vld [vmem:[#allocation7 + $0x7d0] sm:$0xff] }
 0x232   :  { %v2378_v27 = vpack.c.bf16 %v1086_v26, %v1085_v25  ;;  %v1178_v25 = vld [vmem:[#allocation7 + $0x7c8] sm:$0xff]  ;;  %v1192_v26 = vmul.f32 %v1176_v8, %v2668_v9  ;;  %v1228_v18 = vmul.f32 %v1212_v12, %v2672_v15  ;;  %v1280_v28 = vmul.f32 %v1264_v13, %v2674_v16  ;;  %v1180_v45 = vld [vmem:[#allocation7 + $0x7d8] sm:$0xff]  ;;  %v1215_v46 = vld [vmem:[#allocation7 + $0x850] sm:$0xff] }
 0x233   :  { %2370 = vmatpush3.bf16.msra.mxu0 %v2369_v47  ;;  %v1188_v47 = vmul.f32 %v1172_v43, %v2668_v9  ;;  %v1281_v36 = vmul.f32 %v1265_v14, %v2674_v16  ;;  %v1193_v43 = vmul.f32 %v1177_v24, %v2668_v9  ;;  %v1194_v44 = vmul.f32 %v1178_v25, %v2668_v9  ;;  %v1182_v63 = vld [vmem:[#allocation7 + $0x7e8] sm:$0xff]  ;;  %v1217_v1 = vld [vmem:[#allocation7 + $0x860] sm:$0xff] }
 0x234   :  { %2371 = vmatprep.subr.bf16.mxu0 %v2578_v0  ;;  %v1244_v42 = vadd.f32 %v1228_v18, %v1192_v26  ;;  %v1229_v48 = vmul.f32 %v1213_v29, %v2672_v15  ;;  %v1230_v50 = vmul.f32 %v1214_v31, %v2672_v15  ;;  %v1270_v13 = vld [vmem:[#allocation7 + $0x8e0] sm:$0xff]  ;;  %v1271_v14 = vld [vmem:[#allocation7 + $0x8e8] sm:$0xff] }
 0x235   :  { %v1287_v26 = vmul.f32 %v1271_v14, %v2674_v16  ;;  %v764_v31 = vld [vmem:[#allocation9 + $0x9] sm:$0x1] }
 0x237   :  { %2373 = vmatpush3.bf16.msra.mxu0 %v2372_v30  ;;  %v1276_v30 = vmul.f32 %v1260_v51, %v2674_v16  ;;  %v1282_v51 = vmul.f32 %v1266_v32, %v2674_v16  ;;  %v816_v32 = vld [vmem:[#allocation9 + $0xa] sm:$0x1] }
 0x238   :  { %2374 = vmatprep.subr.bf16.mxu0 %v2578_v0 }
 0x239   :  { %v1292_v11 = vadd.f32 %v1276_v30, %v1239_v60  ;;  %v1283_v30 = vmul.f32 %v1267_v39, %v2674_v16  ;;  %v1196_v60 = vmul.f32 %v1180_v45, %v2668_v9 }
 0x23b   :  { %2376 = vmatpush3.bf16.msra.mxu0 %v2375_v55  ;;  %v1174_v55 = vld [vmem:[#allocation7 + $0x7a8] sm:$0xff] }
 0x23c   :  { %2377 = vmatprep.subr.bf16.mxu0 %v2578_v0  ;;  %v1190_v61 = vmul.f32 %v1174_v55, %v2668_v9  ;;  %v1269_v55 = vld [vmem:[#allocation7 + $0x8d8] sm:$0xff] }
 0x23f   :  { %2379 = vmatpush3.bf16.msra.mxu0 %v2378_v27  ;;  %v1227_v27 = vmul.f32 %v1211_v10, %v2672_v15 }
 0x240   :  { %2404 = vmatprep.subr.bf16.mxu0 %v2578_v0 }
 0x2f5   :  { %v725_v4 = vpop.f32.mrb[2].mxu0 }
 0x2f6   :  { %v726_v5 = vadd.f32 %v725_v4, %v657_v3  ;;  %v2084_v6 = vpop.f32.mrb[3].mxu0  ;;  %v1291_v3 = vadd.f32 %v1275_v41, %v1238_v19  ;;  %v1240_v4 = vadd.f32 %v1224_v20, %v1188_v47  ;;  %v1297_v20 = vadd.f32 %v1281_v36, %v1244_v42 }
 0x2f7   :  { %v1226_v6 = vmul.f32 %v1210_v62, %v2672_v15  ;;  %v1232_v62 = vmul.f32 %v1216_v52, %v2672_v15  ;;  %v1220_v52 = vld [vmem:[#allocation7 + $0x878] sm:$0xff] }
 0x2f8   :  { %v729_v7 = vmax.f32 %v726_v5, 0.0  ;;  %v1225_v5 = vmul.f32 %v1209_v57, %v2672_v15  ;;  %v2381_v17 = vpack.c.bf16 %v1291_v3, %v1290_v58  ;;  %v1293_v21 = vadd.f32 %v1277_v53, %v1240_v4  ;;  %v1218_v3 = vld [vmem:[#allocation7 + $0x868] sm:$0xff] }
 0x2f9   :  { %v1242_v23 = vadd.f32 %v1226_v6, %v1190_v61  ;;  %v1195_v53 = vmul.f32 %v1179_v40, %v2668_v9  ;;  %v1245_v57 = vadd.f32 %v1229_v48, %v1193_v43  ;;  %v1246_v58 = vadd.f32 %v1230_v50, %v1194_v44  ;;  %v1181_v61 = vld [vmem:[#allocation7 + $0x7e0] sm:$0xff]  ;;  %v1219_v48 = vld [vmem:[#allocation7 + $0x870] sm:$0xff] }
 0x2fa   :  { %2118 = vmatmul.mubr.f32.vlgmr.msra.gmra.mrb[2].mxu1 %v729_v7  ;;  %v1175_v7 = vld [vmem:[#allocation7 + $0x7b0] sm:$0xff]  ;;  %v1241_v22 = vadd.f32 %v1225_v5, %v1189_v59  ;;  %v2384_v33 = vpack.c.bf16 %v1293_v21, %v1292_v11  ;;  %v1231_v59 = vmul.f32 %v1215_v46, %v2672_v15  ;;  %v1284_v5 = vmul.f32 %v1268_v54, %v2674_v16 }
 0x2fb   :  { %2187 = vmatprep.mubr.msk.f32.mxu1 %vm2579_vm0, %v2580_v2  ;;  %v1191_v49 = vmul.f32 %v1175_v7, %v2668_v9  ;;  %2382 = vmatpush3.bf16.msra.mxu1 %v2381_v17  ;;  %v1295_v35 = vadd.f32 %v1279_v38, %v1242_v23  ;;  %v1285_v6 = vmul.f32 %v1269_v55, %v2674_v16  ;;  %v1183_v46 = vld [vmem:[#allocation7 + $0x7f0] sm:$0xff] }
 0x2fc   :  { %v1294_v34 = vadd.f32 %v1278_v37, %v1241_v22  ;;  %2383 = vmatprep.subr.bf16.mxu1 %v2578_v0  ;;  %v1298_v7 = vadd.f32 %v1282_v51, %v1245_v57  ;;  %v1299_v8 = vadd.f32 %v1283_v30, %v1246_v58  ;;  %v1247_v10 = vadd.f32 %v1231_v59, %v1195_v53  ;;  %v1272_v30 = vld [vmem:[#allocation7 + $0x8f0] sm:$0xff]  ;;  %v1273_v53 = vld [vmem:[#allocation7 + $0x8f8] sm:$0xff] }
 0x2fd   :  { %v1243_v41 = vadd.f32 %v1227_v27, %v1191_v49  ;;  %v1197_v11 = vmul.f32 %v1181_v61, %v2668_v9  ;;  %v1248_v37 = vadd.f32 %v1232_v62, %v1196_v60  ;;  %v1198_v38 = vmul.f32 %v1182_v63, %v2668_v9  ;;  %v1388_v62 = vld [vmem:[#allocation7 + $0x900] sm:$0xff]  ;;  %v1389_v63 = vld [vmem:[#allocation7 + $0x908] sm:$0xff] }
 0x2fe   :  { %v2387_v47 = vpack.c.bf16 %v1295_v35, %v1294_v34  ;;  %v1233_v49 = vmul.f32 %v1217_v1, %v2672_v15  ;;  %v1234_v12 = vmul.f32 %v1218_v3, %v2672_v15  ;;  %v2393_v17 = vpack.c.bf16 %v1299_v8, %v1298_v7  ;;  %v869_v35 = vld [vmem:[#allocation9 + $0xb] sm:$0x1]  ;;  %v1424_v1 = vld [vmem:[#allocation7 + $0x980] sm:$0xff] }
 0x2ff   :  { %v1296_v19 = vadd.f32 %v1280_v28, %v1243_v41  ;;  %2385 = vmatpush3.bf16.msra.mxu1 %v2384_v33  ;;  %v1300_v21 = vadd.f32 %v1284_v5, %v1247_v10  ;;  %v1286_v22 = vmul.f32 %v1270_v13, %v2674_v16  ;;  %v1301_v23 = vadd.f32 %v1285_v6, %v1248_v37  ;;  %v1425_v5 = vld [vmem:[#allocation7 + $0x988] sm:$0xff]  ;;  %v1477_v7 = vld [vmem:[#allocation7 + $0xa00] sm:$0xff] }
 0x300   :  { %2386 = vmatprep.subr.bf16.mxu1 %v2578_v0  ;;  %v1249_v24 = vadd.f32 %v1233_v49, %v1197_v11  ;;  %v1250_v25 = vadd.f32 %v1234_v12, %v1198_v38  ;;  %v765_v33 = vmul.f32 %v764_v31, %v2668_v9  ;;  %v817_v34 = vmul.f32 %v816_v32, %v2672_v15  ;;  %v1478_v8 = vld [vmem:[#allocation7 + $0xa08] sm:$0xff]  ;;  %v1390_v38 = vld [vmem:[#allocation7 + $0x910] sm:$0xff]  ;;  %v1391_v49 = vld [vmem:[#allocation7 + $0x918] sm:$0xff] }
 0x301   :  { %v2390_v4 = vpack.c.bf16 %v1297_v20, %v1296_v19  ;;  %v2396_v27 = vpack.c.bf16 %v1301_v23, %v1300_v21  ;;  %v870_v39 = vmul.f32 %v869_v35, %v2674_v16  ;;  %v1199_v50 = vmul.f32 %v1183_v46, %v2668_v9  ;;  %v1426_v12 = vld [vmem:[#allocation7 + $0x990] sm:$0xff]  ;;  %v1427_v21 = vld [vmem:[#allocation7 + $0x998] sm:$0xff]  ;;  %v1428_v31 = vld [vmem:[#allocation7 + $0x9a0] sm:$0xff] }
 0x302   :  { %v1302_v18 = vadd.f32 %v1286_v22, %v1249_v24  ;;  %v1303_v28 = vadd.f32 %v1287_v26, %v1250_v25  ;;  %v818_v36 = vadd.f32 %v817_v34, %v765_v33  ;;  %v1235_v19 = vmul.f32 %v1219_v48, %v2672_v15  ;;  %v1479_v23 = vld [vmem:[#allocation7 + $0xa10] sm:$0xff]  ;;  %v1480_v24 = vld [vmem:[#allocation7 + $0xa18] sm:$0xff] }
 0x303   :  { %2388 = vmatpush3.bf16.msra.mxu1 %v2387_v47  ;;  %v1184_v47 = vld [vmem:[#allocation7 + $0x7f8] sm:$0xff]  ;;  %v1236_v20 = vmul.f32 %v1220_v52, %v2672_v15  ;;  %v1288_v55 = vmul.f32 %v1272_v30, %v2674_v16  ;;  %v1289_v57 = vmul.f32 %v1273_v53, %v2674_v16  ;;  %v1404_v3 = vmul.f32 %v1388_v62, %v2668_v9 }
 0x304   :  { %2389 = vmatprep.subr.bf16.mxu1 %v2578_v0  ;;  %v2399_v29 = vpack.c.bf16 %v1303_v28, %v1302_v18  ;;  %v871_v40 = vadd.f32 %v870_v39, %v818_v36  ;;  %v1200_v51 = vmul.f32 %v1184_v47, %v2668_v9  ;;  %v1251_v54 = vadd.f32 %v1235_v19, %v1199_v50  ;;  %v1392_v28 = vld [vmem:[#allocation7 + $0x920] sm:$0xff]  ;;  %v1429_v36 = vld [vmem:[#allocation7 + $0x9a8] sm:$0xff]  ;;  %v1395_v46 = vld [vmem:[#allocation7 + $0x938] sm:$0xff] }
 0x305   :  { %v1440_v6 = vmul.f32 %v1424_v1, %v2672_v15  ;;  %v1441_v10 = vmul.f32 %v1425_v5, %v2672_v15  ;;  %v1493_v11 = vmul.f32 %v1477_v7, %v2674_v16  ;;  %v1494_v37 = vmul.f32 %v1478_v8, %v2674_v16  ;;  %v1481_v39 = vld [vmem:[#allocation7 + $0xa20] sm:$0xff]  ;;  %v1430_v47 = vld [vmem:[#allocation7 + $0x9b0] sm:$0xff]  ;;  %v1431_v19 = vld [vmem:[#allocation7 + $0x9b8] sm:$0xff] }
 0x306   :  { %v876_v41 = vrot.slane %v871_v40, %v2870_v56  ;;  %v1252_v58 = vadd.f32 %v1236_v20, %v1200_v51  ;;  %v1304_v60 = vadd.f32 %v1288_v55, %v1251_v54  ;;  %v1406_v14 = vmul.f32 %v1390_v38, %v2668_v9  ;;  %v1482_v40 = vld [vmem:[#allocation7 + $0xa28] sm:$0xff]  ;;  %v1483_v20 = vld [vmem:[#allocation7 + $0xa30] sm:$0xff]  ;;  %v1484_v30 = vld [vmem:[#allocation7 + $0xa38] sm:$0xff] }
 0x307   :  { %2391 = vmatpush3.bf16.msra.mxu1 %v2390_v4  ;;  %v1405_v4 = vmul.f32 %v1389_v63, %v2668_v9  ;;  %v1456_v13 = vadd.f32 %v1440_v6, %v1404_v3  ;;  %v1442_v22 = vmul.f32 %v1426_v12, %v2672_v15  ;;  %v1443_v26 = vmul.f32 %v1427_v21, %v2672_v15  ;;  %v1432_v1 = vld [vmem:[#allocation7 + $0x9c0] sm:$0xff]  ;;  %v1433_v3 = vld [vmem:[#allocation7 + $0x9c8] sm:$0xff] }
 0x308   :  { %2392 = vmatprep.subr.bf16.mxu1 %v2578_v0  ;;  %v1305_v59 = vadd.f32 %v1289_v57, %v1252_v58  ;;  %v1496_v18 = vmul.f32 %v1480_v24, %v2674_v16  ;;  %v1408_v34 = vmul.f32 %v1392_v28, %v2668_v9  ;;  %v1497_v50 = vmul.f32 %v1481_v39, %v2674_v16  ;;  %v1396_v58 = vld [vmem:[#allocation7 + $0x940] sm:$0xff]  ;;  %v1435_v24 = vld [vmem:[#allocation7 + $0x9d8] sm:$0xff]  ;;  %v1487_v28 = vld [vmem:[#allocation7 + $0xa50] sm:$0xff] }
 0x309   :  { %v1457_v25 = vadd.f32 %v1441_v10, %v1405_v4  ;;  %v1509_v32 = vadd.f32 %v1493_v11, %v1456_v13  ;;  %v1458_v33 = vadd.f32 %v1442_v22, %v1406_v14  ;;  %v1498_v51 = vmul.f32 %v1482_v40, %v2674_v16  ;;  %v1485_v4 = vld [vmem:[#allocation7 + $0xa40] sm:$0xff]  ;;  %v1486_v10 = vld [vmem:[#allocation7 + $0xa48] sm:$0xff]  ;;  %v1398_v11 = vld [vmem:[#allocation7 + $0x950] sm:$0xff] }
 0x30a   :  { %v2402_v61 = vpack.c.bf16 %v1305_v59, %v1304_v60  ;;  %v1397_v60 = vld [vmem:[#allocation7 + $0x948] sm:$0xff]  ;;  %v1411_v59 = vmul.f32 %v1395_v46, %v2668_v9  ;;  %v1447_v62 = vmul.f32 %v1431_v19, %v2672_v15  ;;  %v1499_v63 = vmul.f32 %v1483_v20, %v2674_v16  ;;  %v1399_v13 = vld [vmem:[#allocation7 + $0x958] sm:$0xff]  ;;  %v1434_v14 = vld [vmem:[#allocation7 + $0x9d0] sm:$0xff] }
 0x30b   :  { %2394 = vmatpush3.bf16.msra.mxu1 %v2393_v17  ;;  %v1407_v17 = vmul.f32 %v1391_v49, %v2668_v9  ;;  %v1500_v8 = vmul.f32 %v1484_v30, %v2674_v16  ;;  %v1412_v49 = vmul.f32 %v1396_v58, %v2668_v9  ;;  %v1413_v12 = vmul.f32 %v1397_v60, %v2668_v9  ;;  %v1401_v39 = vld [vmem:[#allocation7 + $0x968] sm:$0xff]  ;;  %v1436_v40 = vld [vmem:[#allocation7 + $0x9e0] sm:$0xff] }
 0x30c   :  { %2395 = vmatprep.subr.bf16.mxu1 %v2578_v0  ;;  %v1463_v38 = vadd.f32 %v1447_v62, %v1411_v59  ;;  %v1448_v21 = vmul.f32 %v1432_v1, %v2672_v15  ;;  %v1449_v22 = vmul.f32 %v1433_v3, %v2672_v15  ;;  %v1489_v20 = vld [vmem:[#allocation7 + $0xa60] sm:$0xff]  ;;  %v1490_v30 = vld [vmem:[#allocation7 + $0xa68] sm:$0xff] }
 0x30d   :  { %v1506_v59 = vmul.f32 %v1490_v30, %v2674_v16  ;;  %v983_v3 = vld [vmem:[#allocation9 + $0xc] sm:$0x1] }
 0x30f   :  { %2397 = vmatpush3.bf16.msra.mxu1 %v2396_v27  ;;  %v1495_v27 = vmul.f32 %v1479_v23, %v2674_v16  ;;  %v1501_v23 = vmul.f32 %v1485_v4, %v2674_v16  ;;  %v1035_v4 = vld [vmem:[#allocation9 + $0xd] sm:$0x1] }
 0x310   :  { %2398 = vmatprep.subr.bf16.mxu1 %v2578_v0 }
 0x311   :  { %v1511_v48 = vadd.f32 %v1495_v27, %v1458_v33  ;;  %v1502_v27 = vmul.f32 %v1486_v10, %v2674_v16  ;;  %v1415_v33 = vmul.f32 %v1399_v13, %v2668_v9 }
 0x313   :  { %2400 = vmatpush3.bf16.msra.mxu1 %v2399_v29  ;;  %v1393_v29 = vld [vmem:[#allocation7 + $0x928] sm:$0xff] }
 0x314   :  { %2401 = vmatprep.subr.bf16.mxu1 %v2578_v0  ;;  %v1409_v35 = vmul.f32 %v1393_v29, %v2668_v9  ;;  %v1488_v29 = vld [vmem:[#allocation7 + $0xa58] sm:$0xff] }
 0x317   :  { %2403 = vmatpush3.bf16.msra.mxu1 %v2402_v61  ;;  %v1446_v61 = vmul.f32 %v1430_v47, %v2672_v15 }
 0x318   :  { %2428 = vmatprep.subr.bf16.mxu1 %v2578_v0 }
 0x3cd   :  { %v944_v42 = vpop.f32.mrb[2].mxu1 }
 0x3ce   :  { %v945_v43 = vadd.f32 %v944_v42, %v876_v41  ;;  %v2119_v44 = vpop.f32.mrb[3].mxu1  ;;  %v1510_v41 = vadd.f32 %v1494_v37, %v1457_v25  ;;  %v1459_v42 = vadd.f32 %v1443_v26, %v1407_v17  ;;  %v1516_v26 = vadd.f32 %v1500_v8, %v1463_v38 }
 0x3cf   :  { %v1445_v44 = vmul.f32 %v1429_v36, %v2672_v15  ;;  %v1451_v36 = vmul.f32 %v1435_v24, %v2672_v15  ;;  %v1439_v24 = vld [vmem:[#allocation7 + $0x9f8] sm:$0xff] }
 0x3d0   :  { %v948_v45 = vmax.f32 %v945_v43, 0.0  ;;  %v1444_v43 = vmul.f32 %v1428_v31, %v2672_v15  ;;  %v2405_v53 = vpack.c.bf16 %v1510_v41, %v1509_v32  ;;  %v1512_v54 = vadd.f32 %v1496_v18, %v1459_v42  ;;  %v1437_v41 = vld [vmem:[#allocation7 + $0x9e8] sm:$0xff] }
 0x3d1   :  { %v1461_v57 = vadd.f32 %v1445_v44, %v1409_v35  ;;  %v1414_v18 = vmul.f32 %v1398_v11, %v2668_v9  ;;  %v1464_v31 = vadd.f32 %v1448_v21, %v1412_v49  ;;  %v1465_v32 = vadd.f32 %v1449_v22, %v1413_v12  ;;  %v1400_v35 = vld [vmem:[#allocation7 + $0x960] sm:$0xff]  ;;  %v1438_v21 = vld [vmem:[#allocation7 + $0x9f0] sm:$0xff] }
 0x3d2   :  { %2153 = vmatmul.mubr.f32.vlgmr.msra.gmra.mrb[4].mxu0 %v948_v45  ;;  %v1394_v45 = vld [vmem:[#allocation7 + $0x930] sm:$0xff]  ;;  %v1460_v55 = vadd.f32 %v1444_v43, %v1408_v34  ;;  %v2408_v5 = vpack.c.bf16 %v1512_v54, %v1511_v48  ;;  %v1450_v34 = vmul.f32 %v1434_v14, %v2672_v15  ;;  %v1503_v43 = vmul.f32 %v1487_v28, %v2674_v16 }
 0x3d3   :  { %2222 = vmatprep.mubr.msk.f32.mxu0 %vm2579_vm0, %v2580_v2  ;;  %v1410_v52 = vmul.f32 %v1394_v45, %v2668_v9  ;;  %2406 = vmatpush3.bf16.msra.mxu0 %v2405_v53  ;;  %v1514_v7 = vadd.f32 %v1498_v51, %v1461_v57  ;;  %v1504_v44 = vmul.f32 %v1488_v29, %v2674_v16  ;;  %v1402_v14 = vld [vmem:[#allocation7 + $0x970] sm:$0xff] }
 0x3d4   :  { %v1513_v6 = vadd.f32 %v1497_v50, %v1460_v55  ;;  %2407 = vmatprep.subr.bf16.mxu0 %v2578_v0  ;;  %v1517_v45 = vadd.f32 %v1501_v23, %v1464_v31  ;;  %v1518_v46 = vadd.f32 %v1502_v27, %v1465_v32  ;;  %v1466_v47 = vadd.f32 %v1450_v34, %v1414_v18  ;;  %v1491_v27 = vld [vmem:[#allocation7 + $0xa70] sm:$0xff]  ;;  %v1492_v18 = vld [vmem:[#allocation7 + $0xa78] sm:$0xff] }
 0x3d5   :  { %v1462_v37 = vadd.f32 %v1446_v61, %v1410_v52  ;;  %v1416_v48 = vmul.f32 %v1400_v35, %v2668_v9  ;;  %v1467_v50 = vadd.f32 %v1451_v36, %v1415_v33  ;;  %v1417_v51 = vmul.f32 %v1401_v39, %v2668_v9  ;;  %v1607_v35 = vld [vmem:[#allocation7 + $0xa80] sm:$0xff]  ;;  %v1608_v36 = vld [vmem:[#allocation7 + $0xa88] sm:$0xff] }
 0x3d6   :  { %v2411_v17 = vpack.c.bf16 %v1514_v7, %v1513_v6  ;;  %v1452_v52 = vmul.f32 %v1436_v40, %v2672_v15  ;;  %v1453_v19 = vmul.f32 %v1437_v41, %v2672_v15  ;;  %v2417_v53 = vpack.c.bf16 %v1518_v46, %v1517_v45  ;;  %v1088_v7 = vld [vmem:[#allocation9 + $0xe] sm:$0x1]  ;;  %v1643_v39 = vld [vmem:[#allocation7 + $0xb00] sm:$0xff] }
 0x3d7   :  { %v1515_v25 = vadd.f32 %v1499_v63, %v1462_v37  ;;  %2409 = vmatpush3.bf16.msra.mxu0 %v2408_v5  ;;  %v1519_v54 = vadd.f32 %v1503_v43, %v1466_v47  ;;  %v1505_v55 = vmul.f32 %v1489_v20, %v2674_v16  ;;  %v1520_v57 = vadd.f32 %v1504_v44, %v1467_v50  ;;  %v1696_v44 = vld [vmem:[#allocation7 + $0xb80] sm:$0xff]  ;;  %v1697_v45 = vld [vmem:[#allocation7 + $0xb88] sm:$0xff]  ;;  %v1609_v50 = vld [vmem:[#allocation7 + $0xa90] sm:$0xff] }
 0x3d8   :  { %2410 = vmatprep.subr.bf16.mxu0 %v2578_v0  ;;  %v1468_v58 = vadd.f32 %v1452_v52, %v1416_v48  ;;  %v1469_v60 = vadd.f32 %v1453_v19, %v1417_v51  ;;  %v984_v5 = vmul.f32 %v983_v3, %v2668_v9  ;;  %v1036_v6 = vmul.f32 %v1035_v4, %v2672_v15  ;;  %v1610_v51 = vld [vmem:[#allocation7 + $0xa98] sm:$0xff]  ;;  %v1645_v52 = vld [vmem:[#allocation7 + $0xb10] sm:$0xff] }
 0x3d9   :  { %v2414_v42 = vpack.c.bf16 %v1516_v26, %v1515_v25  ;;  %v2420_v61 = vpack.c.bf16 %v1520_v57, %v1519_v54  ;;  %v1089_v10 = vmul.f32 %v1088_v7, %v2674_v16  ;;  %v1418_v22 = vmul.f32 %v1402_v14, %v2668_v9  ;;  %v1699_v57 = vld [vmem:[#allocation7 + $0xb98] sm:$0xff]  ;;  %v1648_v7 = vld [vmem:[#allocation7 + $0xb28] sm:$0xff]  ;;  %v1649_v14 = vld [vmem:[#allocation7 + $0xb30] sm:$0xff] }
 0x3da   :  { %v1521_v62 = vadd.f32 %v1505_v55, %v1468_v58  ;;  %v1522_v63 = vadd.f32 %v1506_v59, %v1469_v60  ;;  %v1037_v8 = vadd.f32 %v1036_v6, %v984_v5  ;;  %v1454_v25 = vmul.f32 %v1438_v21, %v2672_v15  ;;  %v1698_v55 = vld [vmem:[#allocation7 + $0xb90] sm:$0xff] }
 0x3db   :  { %2412 = vmatpush3.bf16.msra.mxu0 %v2411_v17  ;;  %v1403_v17 = vld [vmem:[#allocation7 + $0x978] sm:$0xff]  ;;  %v1455_v26 = vmul.f32 %v1439_v24, %v2672_v15  ;;  %v1507_v29 = vmul.f32 %v1491_v27, %v2674_v16  ;;  %v1508_v31 = vmul.f32 %v1492_v18, %v2674_v16  ;;  %v1623_v40 = vmul.f32 %v1607_v35, %v2668_v9 }
 0x3dc   :  { %2413 = vmatprep.subr.bf16.mxu0 %v2578_v0  ;;  %v2423_v1 = vpack.c.bf16 %v1522_v63, %v1521_v62  ;;  %v1090_v11 = vadd.f32 %v1089_v10, %v1037_v8  ;;  %v1419_v23 = vmul.f32 %v1403_v17, %v2668_v9  ;;  %v1470_v28 = vadd.f32 %v1454_v25, %v1418_v22  ;;  %v1611_v62 = vld [vmem:[#allocation7 + $0xaa0] sm:$0xff]  ;;  %v1612_v63 = vld [vmem:[#allocation7 + $0xaa8] sm:$0xff]  ;;  %v1650_v24 = vld [vmem:[#allocation7 + $0xb38] sm:$0xff] }
 0x3dd   :  { %v1624_v41 = vmul.f32 %v1608_v36, %v2668_v9  ;;  %v1659_v43 = vmul.f32 %v1643_v39, %v2672_v15  ;;  %v1712_v47 = vmul.f32 %v1696_v44, %v2674_v16  ;;  %v1713_v48 = vmul.f32 %v1697_v45, %v2674_v16  ;;  %v1700_v8 = vld [vmem:[#allocation7 + $0xba0] sm:$0xff]  ;;  %v1701_v10 = vld [vmem:[#allocation7 + $0xba8] sm:$0xff]  ;;  %v1702_v25 = vld [vmem:[#allocation7 + $0xbb0] sm:$0xff] }
 0x3de   :  { %v1095_v37 = vrot.slane %v1090_v11, %v2870_v56  ;;  %v1523_v32 = vadd.f32 %v1507_v29, %v1470_v28  ;;  %v1625_v20 = vmul.f32 %v1609_v50, %v2668_v9  ;;  %v1626_v30 = vmul.f32 %v1610_v51, %v2668_v9  ;;  %v1651_v36 = vld [vmem:[#allocation7 + $0xb40] sm:$0xff]  ;;  %v1652_v39 = vld [vmem:[#allocation7 + $0xb48] sm:$0xff] }
 0x3df   :  { %2415 = vmatpush3.bf16.msra.mxu0 %v2414_v42  ;;  %v1644_v42 = vld [vmem:[#allocation7 + $0xb08] sm:$0xff]  ;;  %v1675_v19 = vadd.f32 %v1659_v43, %v1623_v40  ;;  %v1661_v54 = vmul.f32 %v1645_v52, %v2672_v15  ;;  %v1714_v59 = vmul.f32 %v1698_v55, %v2674_v16  ;;  %v1627_v5 = vmul.f32 %v1611_v62, %v2668_v9  ;;  %v1704_v40 = vld [vmem:[#allocation7 + $0xbc0] sm:$0xff]  ;;  %v1618_v52 = vld [vmem:[#allocation7 + $0xad8] sm:$0xff] }
 0x3e0   :  { %2416 = vmatprep.subr.bf16.mxu0 %v2578_v0  ;;  %v1660_v46 = vmul.f32 %v1644_v42, %v2672_v15  ;;  %v1628_v6 = vmul.f32 %v1612_v63, %v2668_v9  ;;  %v1716_v21 = vmul.f32 %v1700_v8, %v2674_v16  ;;  %v1717_v22 = vmul.f32 %v1701_v10, %v2674_v16  ;;  %v1705_v45 = vld [vmem:[#allocation7 + $0xbc8] sm:$0xff]  ;;  %v1654_v55 = vld [vmem:[#allocation7 + $0xb58] sm:$0xff]  ;;  %v1655_v8 = vld [vmem:[#allocation7 + $0xb60] sm:$0xff] }
 0x3e1   :  { %v1728_v3 = vadd.f32 %v1712_v47, %v1675_v19  ;;  %v1677_v4 = vadd.f32 %v1661_v54, %v1625_v20  ;;  %v1718_v35 = vmul.f32 %v1702_v25, %v2674_v16  ;;  %v1653_v19 = vld [vmem:[#allocation7 + $0xb50] sm:$0xff]  ;;  %v1720_v54 = vmul.f32 %v1704_v40, %v2674_v16  ;;  %v1707_v62 = vld [vmem:[#allocation7 + $0xbd8] sm:$0xff]  ;;  %v1656_v10 = vld [vmem:[#allocation7 + $0xb68] sm:$0xff] }
 0x3e2   :  { %v1676_v58 = vadd.f32 %v1660_v46, %v1624_v41  ;;  %v1617_v46 = vld [vmem:[#allocation7 + $0xad0] sm:$0xff]  ;;  %v1709_v25 = vld [vmem:[#allocation7 + $0xbe8] sm:$0xff] }
 0x3e3   :  { %2418 = vmatpush3.bf16.msra.mxu0 %v2417_v53  ;;  %v1646_v53 = vld [vmem:[#allocation7 + $0xb18] sm:$0xff]  ;;  %v1730_v17 = vadd.f32 %v1714_v59, %v1677_v4  ;;  %v1633_v59 = vmul.f32 %v1617_v46, %v2668_v9  ;;  %v1669_v4 = vmul.f32 %v1653_v19, %v2672_v15  ;;  %v1657_v19 = vld [vmem:[#allocation7 + $0xb70] sm:$0xff] }
 0x3e4   :  { %2419 = vmatprep.subr.bf16.mxu0 %v2578_v0  ;;  %v1662_v60 = vmul.f32 %v1646_v53, %v2672_v15  ;;  %v1729_v11 = vadd.f32 %v1713_v48, %v1676_v58  ;;  %v1668_v53 = vmul.f32 %v1652_v39, %v2672_v15  ;;  %v1254_v39 = vld [vmem:[#allocation9 + $0x10] sm:$0x1] }
 0x3e6   :  { %v2429_v27 = vpack.c.bf16 %v1729_v11, %v1728_v3  ;;  %v1634_v3 = vmul.f32 %v1618_v52, %v2668_v9  ;;  %v1621_v52 = vld [vmem:[#allocation7 + $0xaf0] sm:$0xff] }
 0x3e7   :  { %2421 = vmatpush3.bf16.msra.mxu0 %v2420_v61  ;;  %v1715_v61 = vmul.f32 %v1699_v57, %v2674_v16 }
 0x3e8   :  { %2422 = vmatprep.subr.bf16.mxu0 %v2578_v0 }
 0x3eb   :  { %2424 = vmatpush3.bf16.msra.mxu0 %v2423_v1  ;;  %v1647_v1 = vld [vmem:[#allocation7 + $0xb20] sm:$0xff] }
 0x3ec   :  { %2425 = vmatprep.subr.bf16.mxu0 %v2578_v0 }
 0x4a5   :  { %v1163_v38 = vpop.f32.mrb[4].mxu0 }
 0x4a6   :  { %v1164_v49 = vadd.f32 %v1163_v38, %v1095_v37  ;;  %v2154_v12 = vpop.f32.mrb[5].mxu0  ;;  %v1678_v37 = vadd.f32 %v1662_v60, %v1626_v30  ;;  %v1663_v38 = vmul.f32 %v1647_v1, %v2672_v15  ;;  %v1667_v30 = vmul.f32 %v1651_v36, %v2672_v15  ;;  %v1202_v36 = vld [vmem:[#allocation9 + $0xf] sm:$0x1] }
 0x4a7   :  { %v1613_v12 = vld [vmem:[#allocation7 + $0xab0] sm:$0xff]  ;;  %v1721_v60 = vmul.f32 %v1705_v45, %v2674_v16  ;;  %v1203_v40 = vmul.f32 %v1202_v36, %v2668_v9 }
 0x4a8   :  { %v1167_v13 = vmax.f32 %v1164_v49, 0.0  ;;  %v1664_v49 = vmul.f32 %v1648_v7, %v2672_v15  ;;  %v1731_v18 = vadd.f32 %v1715_v61, %v1678_v37  ;;  %v1679_v28 = vadd.f32 %v1663_v38, %v1627_v5  ;;  %v1706_v61 = vld [vmem:[#allocation7 + $0xbd0] sm:$0xff]  ;;  %v1619_v5 = vld [vmem:[#allocation7 + $0xae0] sm:$0xff]  ;;  %v1620_v7 = vld [vmem:[#allocation7 + $0xae8] sm:$0xff] }
 0x4a9   :  { %v1722_v37 = vmul.f32 %v1706_v61, %v2674_v16  ;;  %v1723_v38 = vmul.f32 %v1707_v62, %v2674_v16 }
 0x4aa   :  { %2188 = vmatmul.mubr.f32.vlgmr.msra.gmra.mrb[4].mxu1 %v1167_v13  ;;  %v1614_v13 = vld [vmem:[#allocation7 + $0xab8] sm:$0xff]  ;;  %v1680_v29 = vadd.f32 %v1664_v49, %v1628_v6  ;;  %v2432_v41 = vpack.c.bf16 %v1731_v18, %v1730_v17  ;;  %v1732_v42 = vadd.f32 %v1716_v21, %v1679_v28  ;;  %v1670_v6 = vmul.f32 %v1654_v55, %v2672_v15 }
 0x4ab   :  { %2257 = vmatprep.mubr.msk.f32.mxu1 %vm2579_vm0, %v2580_v2  ;;  %v1471_v2 = vadd.f32 %v1455_v26, %v1419_v23  ;;  %v1629_v23 = vmul.f32 %v1613_v12, %v2668_v9  ;;  %v1703_v26 = vld [vmem:[#allocation7 + $0xbb8] sm:$0xff]  ;;  %2430 = vmatpush3.bf16.msra.mxu1 %v2429_v27  ;;  %v1636_v21 = vmul.f32 %v1620_v7, %v2668_v9 }
 0x4ac   :  { %v1733_v43 = vadd.f32 %v1717_v22, %v1680_v29  ;;  %v1719_v44 = vmul.f32 %v1703_v26, %v2674_v16  ;;  %2431 = vmatprep.subr.bf16.mxu1 %v2578_v0  ;;  %v1686_v17 = vadd.f32 %v1670_v6, %v1634_v3  ;;  %v1671_v22 = vmul.f32 %v1655_v8, %v2672_v15  ;;  %v1526_v8 = vld [vmem:[#allocation9 + $0x14] sm:$0x1] }
 0x4ad   :  { %v1524_v33 = vadd.f32 %v1508_v31, %v1471_v2  ;;  %v1615_v31 = vld [vmem:[#allocation7 + $0xac0] sm:$0xff]  ;;  %v1616_v2 = vld [vmem:[#allocation7 + $0xac8] sm:$0xff] }
 0x4ae   :  { %v1631_v50 = vmul.f32 %v1615_v31, %v2668_v9  ;;  %v1632_v51 = vmul.f32 %v1616_v2, %v2668_v9  ;;  %v2435_v20 = vpack.c.bf16 %v1733_v43, %v1732_v42  ;;  %v1739_v28 = vadd.f32 %v1723_v38, %v1686_v17  ;;  %v1307_v42 = vld [vmem:[#allocation9 + $0x11] sm:$0x1]  ;;  %v1640_v17 = vld [vmem:[#allocation9 + $0x15] sm:$0x1] }
 0x4af   :  { %v2426_v34 = vpack.c.bf16 %v1524_v33, %v1523_v32  ;;  %v1630_v32 = vmul.f32 %v1614_v13, %v2668_v9  ;;  %v1665_v33 = vmul.f32 %v1649_v14, %v2672_v15  ;;  %2433 = vmatpush3.bf16.msra.mxu1 %v2432_v41  ;;  %v1685_v13 = vadd.f32 %v1669_v4, %v1633_v59  ;;  %v1421_v4 = vld [vmem:[#allocation9 + $0x12] sm:$0x1] }
 0x4b0   :  { %v1683_v63 = vadd.f32 %v1667_v30, %v1631_v50  ;;  %v1684_v1 = vadd.f32 %v1668_v53, %v1632_v51  ;;  %2434 = vmatprep.subr.bf16.mxu1 %v2578_v0  ;;  %v1635_v14 = vmul.f32 %v1619_v5, %v2668_v9  ;;  %v1725_v2 = vmul.f32 %v1709_v25, %v2674_v16  ;;  %v1658_v53 = vld [vmem:[#allocation7 + $0xb78] sm:$0xff]  ;;  %v1473_v5 = vld [vmem:[#allocation9 + $0x13] sm:$0x1] }
 0x4b1   :  { %2427 = vmatpush3.bf16.msra.mxu0 %v2426_v34  ;;  %v1666_v34 = vmul.f32 %v1650_v24, %v2672_v15  ;;  %v1681_v47 = vadd.f32 %v1665_v33, %v1629_v23  ;;  %v1672_v23 = vmul.f32 %v1656_v10, %v2672_v15  ;;  %v1708_v24 = vld [vmem:[#allocation7 + $0xbe0] sm:$0xff]  ;;  %v1738_v27 = vadd.f32 %v1722_v37, %v1685_v13 }
 0x4b2   :  { %v1736_v49 = vadd.f32 %v1720_v54, %v1683_v63  ;;  %v1737_v12 = vadd.f32 %v1721_v60, %v1684_v1  ;;  %v1724_v18 = vmul.f32 %v1708_v24, %v2674_v16  ;;  %v1687_v29 = vadd.f32 %v1671_v22, %v1635_v14  ;;  %v1745_v24 = vld [vmem:[#allocation9 + $0x17] sm:$0x1] }
 0x4b3   :  { %v1682_v48 = vadd.f32 %v1666_v34, %v1630_v32  ;;  %v1734_v57 = vadd.f32 %v1718_v35, %v1681_v47  ;;  %2436 = vmatpush3.bf16.msra.mxu1 %v2435_v20  ;;  %v1688_v31 = vadd.f32 %v1672_v23, %v1636_v21  ;;  %v2444_v32 = vpack.c.bf16 %v1739_v28, %v1738_v27  ;;  %v1692_v21 = vld [vmem:[#allocation9 + $0x16] sm:$0x1] }
 0x4b4   :  { %2437 = vmatprep.subr.bf16.mxu1 %v2578_v0  ;;  %v2441_v26 = vpack.c.bf16 %v1737_v12, %v1736_v49  ;;  %v1740_v33 = vadd.f32 %v1724_v18, %v1687_v29  ;;  %v1255_v41 = vmul.f32 %v1254_v39, %v2672_v15  ;;  %v1637_v20 = vmul.f32 %v1621_v52, %v2668_v9 }
 0x4b5   :  { %v1735_v58 = vadd.f32 %v1719_v44, %v1682_v48  ;;  %v1741_v34 = vadd.f32 %v1725_v2, %v1688_v31  ;;  %v1308_v44 = vmul.f32 %v1307_v42, %v2674_v16  ;;  %v1673_v54 = vmul.f32 %v1657_v19, %v2672_v15 }
 0x4b6   :  { %v1256_v43 = vadd.f32 %v1255_v41, %v1203_v40  ;;  %v1674_v55 = vmul.f32 %v1658_v53, %v2672_v15  ;;  %v1422_v6 = vmul.f32 %v1421_v4, %v2668_v9  ;;  %v1474_v7 = vmul.f32 %v1473_v5, %v2672_v15 }
 0x4b7   :  { %v2438_v11 = vpack.c.bf16 %v1735_v58, %v1734_v57  ;;  %v2447_v35 = vpack.c.bf16 %v1741_v34, %v1740_v33  ;;  %v1710_v57 = vld [vmem:[#allocation7 + $0xbf0] sm:$0xff]  ;;  %v1711_v58 = vld [vmem:[#allocation7 + $0xbf8] sm:$0xff]  ;;  %v1689_v60 = vadd.f32 %v1673_v54, %v1637_v20  ;;  %v1641_v22 = vmul.f32 %v1640_v17, %v2668_v9 }
 0x4b8   :  { %v1309_v45 = vadd.f32 %v1308_v44, %v1256_v43  ;;  %v1726_v59 = vmul.f32 %v1710_v57, %v2674_v16  ;;  %v1727_v61 = vmul.f32 %v1711_v58, %v2674_v16  ;;  %v1475_v10 = vadd.f32 %v1474_v7, %v1422_v6 }
 0x4b9   :  { %2439 = vmatpush3.bf16.msra.mxu1 %v2438_v11  ;;  %v1527_v11 = vmul.f32 %v1526_v8, %v2674_v16  ;;  %v1693_v23 = vmul.f32 %v1692_v21, %v2672_v15 }
 0x4ba   :  { %2440 = vmatprep.subr.bf16.mxu1 %v2578_v0  ;;  %v1314_v46 = vrot.slane %v1309_v45, %v2870_v56  ;;  %v1742_v63 = vadd.f32 %v1726_v59, %v1689_v60 }
 0x4bb   :  { %v1528_v37 = vadd.f32 %v1527_v11, %v1475_v10  ;;  %v1694_v25 = vadd.f32 %v1693_v23, %v1641_v22 }
 0x4bd   :  { %2442 = vmatpush3.bf16.msra.mxu1 %v2441_v26  ;;  %v1533_v38 = vrot.slane %v1528_v37, %v2870_v56  ;;  %v1746_v26 = vmul.f32 %v1745_v24, %v2674_v16 }
 0x4be   :  { %2443 = vmatprep.subr.bf16.mxu1 %v2578_v0 }
 0x4bf   :  { %v1747_v27 = vadd.f32 %v1746_v26, %v1694_v25 }
 0x4c1   :  { %2445 = vmatpush3.bf16.msra.mxu1 %v2444_v32  ;;  %v1752_v18 = vrot.slane %v1747_v27, %v2870_v56 }
 0x4c2   :  { %2446 = vmatprep.subr.bf16.mxu1 %v2578_v0 }
 0x4c5   :  { %2448 = vmatpush3.bf16.msra.mxu1 %v2447_v35 }
 0x4c6   :  { %2449 = vmatprep.subr.bf16.mxu1 %v2578_v0  ;;  %v1622_v0 = vld [vmem:[#allocation7 + $0xaf8] sm:$0xff] }
 0x4c7   :  { %v1638_v30 = vmul.f32 %v1622_v0, %v2668_v9 }
 0x4c9   :  { %v1690_v62 = vadd.f32 %v1674_v55, %v1638_v30 }
 0x4cb   :  { %v1743_v1 = vadd.f32 %v1727_v61, %v1690_v62 }
 0x4cd   :  { %v2450_v3 = vpack.c.bf16 %v1743_v1, %v1742_v63 }
 0x4cf   :  { %2451 = vmatpush3.bf16.msra.mxu1 %v2450_v3 }
 0x57d   :  { %v1382_v47 = vpop.f32.mrb[4].mxu1 }
 0x57e   :  { %v1383_v48 = vadd.f32 %v1382_v47, %v1314_v46  ;;  %v2189_v50 = vpop.f32.mrb[5].mxu1 }
 0x580   :  { %v1386_v51 = vmax.f32 %v1383_v48, 0.0 }
 0x582   :  { %2223 = vmatmul.mubr.f32.vlgmr.msra.gmra.mrb[6].mxu0 %v1386_v51 }
 0x655   :  { %v1601_v49 = vpop.f32.mrb[6].mxu0 }
 0x656   :  { %v1602_v12 = vadd.f32 %v1601_v49, %v1533_v38  ;;  %v2224_v13 = vpop.f32.mrb[7].mxu0 }
 0x658   :  { %v1605_v14 = vmax.f32 %v1602_v12, 0.0 }
 0x65a   :  { %2258 = vmatmul.mubr.f32.vlgmr.msra.gmra.mrb[6].mxu1 %v1605_v14 }
 0x72d   :  { %v1820_v28 = vpop.f32.mrb[6].mxu1 }
 0x72e   :  { %v1821_v29 = vadd.f32 %v1820_v28, %v1752_v18  ;;  %v2259_v31 = vpop.f32.mrb[7].mxu1 }
 0x730   :  { %1824 = vst [vmem:[#allocation10] sm:$0xff] %v1821_v29 }
 0x731   :  { %2551 = shalt.err (!%p2548_p3)
}
 0x732   :  { %s2552_s16 = scalar_lea.hbm %s3212_s4, 128 }
 0x733   :  { %p2553_p4 = scmp.ne.s32.totalorder %s3212_s4, %s2552_s16  ;;  %p2556_p5 = scmp.lt.u32.totalorder %s2552_s16, %s3212_s4 }
 0x735   :  { %p2558_p6 = pnand %p2556_p5, %p2553_p4 }
 0x737   :  { %2561 = shalt.err (!%p2558_p6)
}
 0x738   :  { %1834 = dma.vmem_to_hbm [thread:$0]  %s1832_s2, 128, %s3212_s4, [#allocation4]  }
 0x739   :  { %2568 = dma.done.wait [#allocation4], 128  }
 0x73a   :  { %2569 = vsyncadd [#allocation4], 4294967168 }
 0x73b   :  { %1838 = vsyncpa [#allocation3], 1 }
 0x73c   :  { %1839 = vsyncpa [#allocation8], 1 }
 0x73d   :  { %1840 = vsyncpa [#allocation4], 1 }
 0x73e   :  { %1841 = vsyncpa [#allocation5], 1 }

</bundles_post_ra>
